<compile_context>
chip_gen: v7x
topology: tpu7x:2x2x1
jax: 0.10.0
libtpu: 0.0.40
codegen_flags: <defaults>
</compile_context>

<pallas_src>
import functools

import jax
import jax.numpy as jnp
from jax import lax
from jax.experimental import pallas as pl
from jax.experimental.pallas import tpu as pltpu

FT_VEC_SIZE = 300
F_PAD = 384          # 300 padded to a multiple of 128 (lane-aligned K)
H1 = 512
H2 = 1024
N_CLASSES = 2
C_PAD = 128          # 2-class output padded to a full lane width

_NEG_BIG = -1e30     # effectively -inf for the padded class lanes


def _round_up(x, m):
    return ((x + m - 1) // m) * m


def _choose_tile(batch, tile_b):
    """Pick a batch tile: big enough to feed the MXU, small enough for VMEM,
    and (for large batches) leaving >= 2 grid steps so dual-TC chips (v7x)
    can shard the parallel batch axis."""
    tb = min(tile_b, _round_up(batch, 8))
    if batch >= 512:
        tb = min(tb, _round_up((batch + 1) // 2, 256))
    return max(8, _round_up(tb, 8))


def _mlp_kernel(x_ref, w1_ref, b1_ref, w2_ref, b2_ref, w3_ref, b3_ref, o_ref):
    """Fused 3-layer MLP + log-softmax for one (tile_b, F_PAD) batch tile."""
    # fc[0]: Linear(300->512) + ReLU   (Dropout -> identity in eval)
    h1 = jnp.dot(x_ref[...], w1_ref[...], preferred_element_type=jnp.float32)
    h1 = jnp.maximum(h1 + b1_ref[...], 0.0)                       # (tb, 512) f32

    # fc[3]: Linear(512->1024) + ReLU  (Dropout -> identity in eval)
    h2 = jnp.dot(h1.astype(jnp.bfloat16), w2_ref[...],
                 preferred_element_type=jnp.float32)
    h2 = jnp.maximum(h2 + b2_ref[...], 0.0)                       # (tb, 1024) f32

    # final: Linear(1024->2), padded to 128 output lanes (lane-dense N)
    logits = jnp.dot(h2.astype(jnp.bfloat16), w3_ref[...],
                     preferred_element_type=jnp.float32)
    logits = logits + b3_ref[...]                                 # (tb, 128) f32

    # Mask padded class lanes so they don't perturb the softmax normalizer.
    lane = lax.broadcasted_iota(jnp.int32, logits.shape, 1)
    logits = jnp.where(lane < N_CLASSES, logits, _NEG_BIG)

    # LogSoftmax over the class dim (numerically stable).
    m = jnp.max(logits, axis=-1, keepdims=True)
    lse = jnp.log(jnp.sum(jnp.exp(logits - m), axis=-1, keepdims=True)) + m
    o_ref[...] = (logits - lse).astype(o_ref.dtype)


@functools.partial(jax.jit, static_argnames=("tile_b",))
def ft_sent_vectors_forward(sent_vector, params, tile_b=512):
    """sent_vector: (B, 300) float32.  params: dict with w1/b1/w2/b2/w3/b3
    stored as (in_features, out_features) weights (transpose of nn.Linear)."""
    B, F = sent_vector.shape
    assert F == FT_VEC_SIZE

    tb = _choose_tile(B, tile_b)
    Bp = _round_up(B, tb)
    grid = (Bp // tb,)

    # Lane-aligned, bf16 matmul operands (f32 accumulation inside the kernel).
    x = jnp.pad(sent_vector, ((0, Bp - B), (0, F_PAD - F))).astype(jnp.bfloat16)
    w1 = jnp.pad(params["w1"],
                 ((0, F_PAD - FT_VEC_SIZE), (0, 0))).astype(jnp.bfloat16)
    w2 = params["w2"].astype(jnp.bfloat16)
    w3 = jnp.pad(params["w3"],
                 ((0, 0), (0, C_PAD - N_CLASSES))).astype(jnp.bfloat16)
    b1 = params["b1"].reshape(1, H1).astype(jnp.float32)
    b2 = params["b2"].reshape(1, H2).astype(jnp.float32)
    b3 = jnp.pad(params["b3"].reshape(1, N_CLASSES),
                 ((0, 0), (0, C_PAD - N_CLASSES))).astype(jnp.float32)

    in_specs = [
        pl.BlockSpec((tb, F_PAD), lambda i: (i, 0)),          # x tile (pipelined)
        pl.BlockSpec((F_PAD, H1), lambda i: (0, 0)),          # w1 (VMEM-resident)
        pl.BlockSpec((1, H1), lambda i: (0, 0)),              # b1
        pl.BlockSpec((H1, H2), lambda i: (0, 0)),             # w2
        pl.BlockSpec((1, H2), lambda i: (0, 0)),              # b2
        pl.BlockSpec((H2, C_PAD), lambda i: (0, 0)),          # w3 (lane-padded)
        pl.BlockSpec((1, C_PAD), lambda i: (0, 0)),           # b3
    ]
    out_specs = pl.BlockSpec((tb, C_PAD), lambda i: (i, 0))   # lane-dense store

    flops = 2 * Bp * (F_PAD * H1 + H1 * H2 + H2 * C_PAD)
    bytes_accessed = (
        Bp * F_PAD * 2                                    # x (bf16)
        + (F_PAD * H1 + H1 * H2 + H2 * C_PAD) * 2         # weights (bf16)
        + (H1 + H2 + C_PAD) * 4                           # biases (f32)
        + Bp * C_PAD * 4                                  # output (f32)
    )

    out = pl.pallas_call(
        _mlp_kernel,
        out_shape=jax.ShapeDtypeStruct((Bp, C_PAD), jnp.float32),
        grid_spec=pltpu.PrefetchScalarGridSpec(
            num_scalar_prefetch=0,
            grid=grid,
            in_specs=in_specs,
            out_specs=out_specs,
        ),
        compiler_params=pltpu.CompilerParams(
            dimension_semantics=("parallel",),
            vmem_limit_bytes=48 * 1024 * 1024,
        ),
        cost_estimate=pl.CostEstimate(
            flops=flops,
            transcendentals=Bp * C_PAD,
            bytes_accessed=bytes_accessed,
        ),
    )(x, w1, b1, w2, b2, w3, b3)

    # Drop batch padding and padded class lanes.
    return out[:B, :N_CLASSES]


def init_params(key):
    """Deterministic synthetic init matching nn.Linear shapes (transposed)."""
    def linear_init(k, fan_in, fan_out):
        kw, kb = jax.random.split(k)
        bound = 1.0 / jnp.sqrt(fan_in)
        w = jax.random.uniform(kw, (fan_in, fan_out), jnp.float32, -bound, bound)
        b = jax.random.uniform(kb, (1, fan_out), jnp.float32, -bound, bound)
        return w, b

    k1, k2, k3 = jax.random.split(key, 3)
    w1, b1 = linear_init(k1, FT_VEC_SIZE, H1)
    w2, b2 = linear_init(k2, H1, H2)
    w3, b3 = linear_init(k3, H2, N_CLASSES)
    return {"w1": w1, "b1": b1, "w2": w2, "b2": b2, "w3": w3, "b3": b3}


def reference_forward(sent_vector, params):
    """Pure-JAX f32 reference for correctness checking (eval-mode dropout)."""
    h1 = jnp.maximum(sent_vector @ params["w1"] + params["b1"], 0.0)
    h2 = jnp.maximum(h1 @ params["w2"] + params["b2"], 0.0)
    logits = h2 @ params["w3"] + params["b3"]
    return jax.nn.log_softmax(logits, axis=1)


if __name__ == "__main__":
    key = jax.random.PRNGKey(0)
    kp, kx1, kx2 = jax.random.split(key, 3)

    params = init_params(kp)

    # Small aligned batch.
    B1 = 16
    x1 = jax.random.normal(kx1, (B1, FT_VEC_SIZE), jnp.float32)
    out1 = jax.block_until_ready(ft_sent_vectors_forward(x1, params))
    ref1 = reference_forward(x1, params)
    assert out1.shape == (B1, N_CLASSES)
    # bf16 matmul operands (f32 accumulation) => looser tolerance vs f32 ref.
    assert jnp.allclose(out1, ref1, atol=5e-2, rtol=5e-2), "mismatch (B=16)"

    # Batch that is not a multiple of the tile / 8 (exercises padding path).
    B2 = 100
    x2 = jax.random.normal(kx2, (B2, FT_VEC_SIZE), jnp.float32)
    out2 = jax.block_until_ready(ft_sent_vectors_forward(x2, params))
    ref2 = reference_forward(x2, params)
    assert out2.shape == (B2, N_CLASSES)
    assert jnp.allclose(out2, ref2, atol=5e-2, rtol=5e-2), "mismatch (B=100)"

    print("KERNEL_OK")
</pallas_src>

<mosaic_0001>
module attributes {stable_mosaic.version = 11 : i64} {
  func.func @_mlp_kernel(%arg0: i32, %arg1: memref<16x384xbf16, #tpu.memory_space<vmem>>, %arg2: memref<384x512xbf16, #tpu.memory_space<vmem>>, %arg3: memref<1x512xf32, #tpu.memory_space<vmem>>, %arg4: memref<512x1024xbf16, #tpu.memory_space<vmem>>, %arg5: memref<1x1024xf32, #tpu.memory_space<vmem>>, %arg6: memref<1024x128xbf16, #tpu.memory_space<vmem>>, %arg7: memref<1x128xf32, #tpu.memory_space<vmem>>, %arg8: memref<16x128xf32, #tpu.memory_space<vmem>>) attributes {dimension_semantics = [#tpu.dimension_semantics<parallel>], iteration_bounds = array<i64: 1>, scalar_prefetch = 0 : i64, scratch_operands = 0 : i64, tpu.core_type = #tpu.core_type<tc>, window_params = [{transform_indices = @transform_0, window_bounds = array<i64: 16, 384>}, {pipeline_mode = #tpu.pipeline_mode<synchronous>, transform_indices = @transform_1, window_bounds = array<i64: 384, 512>}, {pipeline_mode = #tpu.pipeline_mode<synchronous>, transform_indices = @transform_2, window_bounds = array<i64: 1, 512>}, {pipeline_mode = #tpu.pipeline_mode<synchronous>, transform_indices = @transform_3, window_bounds = array<i64: 512, 1024>}, {pipeline_mode = #tpu.pipeline_mode<synchronous>, transform_indices = @transform_4, window_bounds = array<i64: 1, 1024>}, {pipeline_mode = #tpu.pipeline_mode<synchronous>, transform_indices = @transform_5, window_bounds = array<i64: 1024, 128>}, {pipeline_mode = #tpu.pipeline_mode<synchronous>, transform_indices = @transform_6, window_bounds = array<i64: 1, 128>}, {transform_indices = @transform_7, window_bounds = array<i64: 16, 128>}]} {
    %c0 = arith.constant 0 : index
    %c0_0 = arith.constant 0 : index
    %0 = vector.load %arg1[%c0, %c0_0] : memref<16x384xbf16, #tpu.memory_space<vmem>>, vector<16x384xbf16>
    %c0_1 = arith.constant 0 : index
    %c0_2 = arith.constant 0 : index
    %1 = vector.load %arg2[%c0_1, %c0_2] : memref<384x512xbf16, #tpu.memory_space<vmem>>, vector<384x512xbf16>
    %cst = arith.constant dense<0.000000e+00> : vector<16x512xf32>
    %2 = tpu.matmul %0, %1, %cst {dimension_numbers = #tpu.dot_dimension_numbers<[1], [0], [0], [1], [0, 0, 1, 1], [], []>} : vector<16x384xbf16>, vector<384x512xbf16>, vector<16x512xf32> -> vector<16x512xf32>
    %c0_3 = arith.constant 0 : index
    %c0_4 = arith.constant 0 : index
    %3 = vector.load %arg3[%c0_3, %c0_4] : memref<1x512xf32, #tpu.memory_space<vmem>>, vector<1x512xf32>
    %4 = vector.broadcast %3 : vector<1x512xf32> to vector<16x512xf32>
    %5 = arith.addf %2, %4 : vector<16x512xf32>
    %cst_5 = arith.constant 0.000000e+00 : f32
    %6 = vector.broadcast %cst_5 : f32 to vector<16x512xf32>
    %7 = arith.maximumf %5, %6 : vector<16x512xf32>
    %8 = arith.truncf %7 : vector<16x512xf32> to vector<16x512xbf16>
    %c0_6 = arith.constant 0 : index
    %c0_7 = arith.constant 0 : index
    %9 = vector.load %arg4[%c0_6, %c0_7] : memref<512x1024xbf16, #tpu.memory_space<vmem>>, vector<512x1024xbf16>
    %cst_8 = arith.constant dense<0.000000e+00> : vector<16x1024xf32>
    %10 = tpu.matmul %8, %9, %cst_8 {dimension_numbers = #tpu.dot_dimension_numbers<[1], [0], [0], [1], [0, 0, 1, 1], [], []>} : vector<16x512xbf16>, vector<512x1024xbf16>, vector<16x1024xf32> -> vector<16x1024xf32>
    %c0_9 = arith.constant 0 : index
    %c0_10 = arith.constant 0 : index
    %11 = vector.load %arg5[%c0_9, %c0_10] : memref<1x1024xf32, #tpu.memory_space<vmem>>, vector<1x1024xf32>
    %12 = vector.broadcast %11 : vector<1x1024xf32> to vector<16x1024xf32>
    %13 = arith.addf %10, %12 : vector<16x1024xf32>
    %cst_11 = arith.constant 0.000000e+00 : f32
    %14 = vector.broadcast %cst_11 : f32 to vector<16x1024xf32>
    %15 = arith.maximumf %13, %14 : vector<16x1024xf32>
    %16 = arith.truncf %15 : vector<16x1024xf32> to vector<16x1024xbf16>
    %c0_12 = arith.constant 0 : index
    %c0_13 = arith.constant 0 : index
    %17 = vector.load %arg6[%c0_12, %c0_13] : memref<1024x128xbf16, #tpu.memory_space<vmem>>, vector<1024x128xbf16>
    %cst_14 = arith.constant dense<0.000000e+00> : vector<16x128xf32>
    %18 = tpu.matmul %16, %17, %cst_14 {dimension_numbers = #tpu.dot_dimension_numbers<[1], [0], [0], [1], [0, 0, 1, 1], [], []>} : vector<16x1024xbf16>, vector<1024x128xbf16>, vector<16x128xf32> -> vector<16x128xf32>
    %c0_15 = arith.constant 0 : index
    %c0_16 = arith.constant 0 : index
    %19 = vector.load %arg7[%c0_15, %c0_16] : memref<1x128xf32, #tpu.memory_space<vmem>>, vector<1x128xf32>
    %20 = vector.broadcast %19 : vector<1x128xf32> to vector<16x128xf32>
    %21 = arith.addf %18, %20 : vector<16x128xf32>
    %22 = tpu.iota {dimensions = array<i32: 1>} : vector<16x128xi32>
    %c2_i32 = arith.constant 2 : i32
    %23 = vector.broadcast %c2_i32 : i32 to vector<16x128xi32>
    %24 = arith.cmpi slt, %22, %23 : vector<16x128xi32>
    %cst_17 = arith.constant -1.000000e+30 : f32
    %25 = vector.broadcast %cst_17 : f32 to vector<16x128xf32>
    %26 = arith.select %24, %21, %25 : vector<16x128xi1>, vector<16x128xf32>
    %cst_18 = arith.constant dense<0xFF800000> : vector<16xf32>
    %27 = vector.multi_reduction <maximumf>, %26, %cst_18 [1] : vector<16x128xf32> to vector<16xf32>
    %28 = vector.shape_cast %27 : vector<16xf32> to vector<16x1xf32>
    %29 = vector.broadcast %28 : vector<16x1xf32> to vector<16x128xf32>
    %30 = arith.subf %26, %29 : vector<16x128xf32>
    %31 = math.exp %30 : vector<16x128xf32>
    %cst_19 = arith.constant dense<0.000000e+00> : vector<16xf32>
    %32 = vector.multi_reduction <add>, %31, %cst_19 [1] : vector<16x128xf32> to vector<16xf32>
    %33 = vector.shape_cast %32 : vector<16xf32> to vector<16x1xf32>
    %34 = math.log %33 : vector<16x1xf32>
    %35 = arith.addf %34, %28 : vector<16x1xf32>
    %36 = vector.broadcast %35 : vector<16x1xf32> to vector<16x128xf32>
    %37 = arith.subf %26, %36 : vector<16x128xf32>
    %c0_20 = arith.constant 0 : index
    %c0_21 = arith.constant 0 : index
    %38 = vector.load %arg8[%c0_20, %c0_21] : memref<16x128xf32, #tpu.memory_space<vmem>>, vector<16x128xf32>
    tpu.vector_store %arg8[%c0_20, %c0_21], %37 {strides = array<i32>} : memref<16x128xf32, #tpu.memory_space<vmem>>, vector<16x128xf32>,
    return
  }
  func.func @transform_0(%arg0: i32) -> (i32, i32) {
    %c0_i32 = arith.constant 0 : i32
    %c0_i32_0 = arith.constant 0 : i32
    return %arg0, %c0_i32 : i32, i32
  }
  func.func @transform_1(%arg0: i32) -> (i32, i32) {
    %c0_i32 = arith.constant 0 : i32
    %c0_i32_0 = arith.constant 0 : i32
    %c0_i32_1 = arith.constant 0 : i32
    return %c0_i32, %c0_i32_0 : i32, i32
  }
  func.func @transform_2(%arg0: i32) -> (i32, i32) {
    %c0_i32 = arith.constant 0 : i32
    %c0_i32_0 = arith.constant 0 : i32
    %c0_i32_1 = arith.constant 0 : i32
    return %c0_i32, %c0_i32_0 : i32, i32
  }
  func.func @transform_3(%arg0: i32) -> (i32, i32) {
    %c0_i32 = arith.constant 0 : i32
    %c0_i32_0 = arith.constant 0 : i32
    %c0_i32_1 = arith.constant 0 : i32
    return %c0_i32, %c0_i32_0 : i32, i32
  }
  func.func @transform_4(%arg0: i32) -> (i32, i32) {
    %c0_i32 = arith.constant 0 : i32
    %c0_i32_0 = arith.constant 0 : i32
    %c0_i32_1 = arith.constant 0 : i32
    return %c0_i32, %c0_i32_0 : i32, i32
  }
  func.func @transform_5(%arg0: i32) -> (i32, i32) {
    %c0_i32 = arith.constant 0 : i32
    %c0_i32_0 = arith.constant 0 : i32
    %c0_i32_1 = arith.constant 0 : i32
    return %c0_i32, %c0_i32_0 : i32, i32
  }
  func.func @transform_6(%arg0: i32) -> (i32, i32) {
    %c0_i32 = arith.constant 0 : i32
    %c0_i32_0 = arith.constant 0 : i32
    %c0_i32_1 = arith.constant 0 : i32
    return %c0_i32, %c0_i32_0 : i32, i32
  }
  func.func @transform_7(%arg0: i32) -> (i32, i32) {
    %c0_i32 = arith.constant 0 : i32
    %c0_i32_0 = arith.constant 0 : i32
    return %arg0, %c0_i32 : i32, i32
  }
}

</mosaic_0001>

<bundles_post_ra>
// kernel: ft_sent_vectors_forward.1
= control target key start
LH: loop header
LB: loop body
LE: loop exit
PB: predicated region body
PF: predicated region fallthrough
CT: control target
= control target key end

     0   :  { %s5643_s1 = inlined_call_operand.vmem [shape: bf16[384,512], index: 1, kind: input, shape index: {}]   ;;  %s5644_s0 = inlined_call_operand.vmem [shape: bf16[16,384], index: 0, kind: input, shape index: {}]   ;;  %s5645_s3 = inlined_call_operand.vmem [shape: bf16[512,1024], index: 3, kind: input, shape index: {}]   ;;  %s5646_s2 = inlined_call_operand.vmem [shape: f32[1,512], index: 2, kind: input, shape index: {}]   ;;  %s5647_s5 = inlined_call_operand.vmem [shape: bf16[1024,128], index: 5, kind: input, shape index: {}]   ;;  %s5648_s4 = inlined_call_operand.vmem [shape: f32[1,1024], index: 4, kind: input, shape index: {}]   ;;  %s5649_s6 = inlined_call_operand.vmem [shape: f32[1,128], index: 6, kind: input, shape index: {}]   ;;  %s5650_s7 = inlined_call_operand.vmem [shape: f32[16,128], index: 7, kind: output, shape index: {}]  }
   0x1   :  { %v4048_v0 = vld [vmem:[%s5643_s1 + $0x4] ss:$16 sps:$4 sm:$0xff]   ;;  %v4050_v1 = vld [vmem:[%s5643_s1] ss:$16 sps:$4 sm:$0xff]   ;;  %v4072_v8 = vld [vmem:[%s5643_s1 + $0xc] ss:$16 sps:$4 sm:$0xff]  }
   0x2   :  { %645 = vmatprep.subr.bf16.mxu0 %v4048_v0  ;;  %v4051_v2 = vld [vmem:[%s5643_s1 + $0x24] ss:$16 sps:$4 sm:$0xff]   ;;  %v4053_v3 = vld [vmem:[%s5643_s1 + $0x20] ss:$16 sps:$4 sm:$0xff]   ;;  %v4074_v9 = vld [vmem:[%s5643_s1 + $0x8] ss:$16 sps:$4 sm:$0xff]   ;;  %731 = vmatprep.subr.bf16.mxu1 %v4072_v8 }
   0x3   :  { %646 = vmatpush1.bf16.msra.mxu0 %v4050_v1  ;;  %v4054_v4 = vld [vmem:[%s5643_s1 + $0x44] ss:$16 sps:$4 sm:$0xff]   ;;  %v4056_v5 = vld [vmem:[%s5643_s1 + $0x40] ss:$16 sps:$4 sm:$0xff]   ;;  %732 = vmatpush1.bf16.msra.mxu1 %v4074_v9  ;;  %v4078_v11 = vld [vmem:[%s5643_s1 + $0x2c] ss:$16 sps:$4 sm:$0xff]  }
   0x4   :  { %647 = vmatprep.subr.bf16.mxu0 %v4051_v2  ;;  %v4057_v6 = vld [vmem:[%s5643_s1 + $0x64] ss:$16 sps:$4 sm:$0xff]   ;;  %v4059_v7 = vld [vmem:[%s5643_s1 + $0x60] ss:$16 sps:$4 sm:$0xff]   ;;  %v4080_v12 = vld [vmem:[%s5643_s1 + $0x28] ss:$16 sps:$4 sm:$0xff]   ;;  %733 = vmatprep.subr.bf16.mxu1 %v4078_v11 }
   0x5   :  { %v4060_v10 = vld [vmem:[%s5643_s1 + $0x84] ss:$16 sps:$4 sm:$0xff]   ;;  %v4062_v13 = vld [vmem:[%s5643_s1 + $0x80] ss:$16 sps:$4 sm:$0xff]   ;;  %v4084_v15 = vld [vmem:[%s5643_s1 + $0x4c] ss:$16 sps:$4 sm:$0xff]  }
   0x6   :  { %v4063_v14 = vld [vmem:[%s5643_s1 + $0xa4] ss:$16 sps:$4 sm:$0xff]   ;;  %v4086_v16 = vld [vmem:[%s5643_s1 + $0x48] ss:$16 sps:$4 sm:$0xff]   ;;  %v4065_v17 = vld [vmem:[%s5643_s1 + $0xa0] ss:$16 sps:$4 sm:$0xff]  }
   0x7   :  { %648 = vmatpush1.bf16.msra.mxu0 %v4053_v3  ;;  %734 = vmatpush1.bf16.msra.mxu1 %v4080_v12  ;;  %v4090_v18 = vld [vmem:[%s5643_s1 + $0x6c] ss:$16 sps:$4 sm:$0xff]   ;;  %v4066_v19 = vld [vmem:[%s5643_s1 + $0xc4] ss:$16 sps:$4 sm:$0xff]   ;;  %v4092_v20 = vld [vmem:[%s5643_s1 + $0x68] ss:$16 sps:$4 sm:$0xff]  }
   0x8   :  { %649 = vmatprep.subr.bf16.mxu0 %v4054_v4  ;;  %735 = vmatprep.subr.bf16.mxu1 %v4084_v15  ;;  %v4068_v21 = vld [vmem:[%s5643_s1 + $0xc0] ss:$16 sps:$4 sm:$0xff]   ;;  %v4096_v22 = vld [vmem:[%s5643_s1 + $0x8c] ss:$16 sps:$4 sm:$0xff]   ;;  %v4069_v23 = vld [vmem:[%s5643_s1 + $0xe4] ss:$16 sps:$4 sm:$0xff]  }
   0x9   :  { %v4098_v24 = vld [vmem:[%s5643_s1 + $0x88] ss:$16 sps:$4 sm:$0xff]   ;;  %v4071_v25 = vld [vmem:[%s5643_s1 + $0xe0] ss:$16 sps:$4 sm:$0xff]   ;;  %v4102_v26 = vld [vmem:[%s5643_s1 + $0xac] ss:$16 sps:$4 sm:$0xff]  }
   0xa   :  { %v4075_v27 = vld [vmem:[%s5643_s1 + $0x104] ss:$16 sps:$4 sm:$0xff]   ;;  %v4104_v28 = vld [vmem:[%s5643_s1 + $0xa8] ss:$16 sps:$4 sm:$0xff]   ;;  %v4077_v29 = vld [vmem:[%s5643_s1 + $0x100] ss:$16 sps:$4 sm:$0xff]  }
   0xb   :  { %650 = vmatpush1.bf16.msra.mxu0 %v4056_v5  ;;  %736 = vmatpush1.bf16.msra.mxu1 %v4086_v16  ;;  %v4108_v30 = vld [vmem:[%s5643_s1 + $0xcc] ss:$16 sps:$4 sm:$0xff]   ;;  %v4081_v31 = vld [vmem:[%s5643_s1 + $0x124] ss:$16 sps:$4 sm:$0xff]   ;;  %v4110_v32 = vld [vmem:[%s5643_s1 + $0xc8] ss:$16 sps:$4 sm:$0xff]  }
   0xc   :  { %651 = vmatprep.subr.bf16.mxu0 %v4057_v6  ;;  %737 = vmatprep.subr.bf16.mxu1 %v4090_v18  ;;  %v4125_v33 = vld [vmem:[%s5644_s0 + $0x4] ss:$12 sps:$4 sm:$0xff]   ;;  %v4114_v35 = vld [vmem:[%s5643_s1 + $0xec] ss:$16 sps:$4 sm:$0xff]   ;;  %v4116_v37 = vld [vmem:[%s5643_s1 + $0xe8] ss:$16 sps:$4 sm:$0xff]  }
   0xd   :  { %v4083_v34 = vld [vmem:[%s5643_s1 + $0x120] ss:$16 sps:$4 sm:$0xff]   ;;  %v4087_v36 = vld [vmem:[%s5643_s1 + $0x144] ss:$16 sps:$4 sm:$0xff]   ;;  %677 = vmatprep.mubr.bf16.mxu0 %v4125_v33  ;;  %763 = vmatprep.mubr.bf16.mxu1 %v4125_v33  ;;  %v4120_v39 = vld [vmem:[%s5643_s1 + $0x10c] ss:$16 sps:$4 sm:$0xff]  }
   0xe   :  { %v4089_v38 = vld [vmem:[%s5643_s1 + $0x140] ss:$16 sps:$4 sm:$0xff]   ;;  %v4093_v40 = vld [vmem:[%s5643_s1 + $0x164] ss:$16 sps:$4 sm:$0xff]   ;;  %v4122_v41 = vld [vmem:[%s5643_s1 + $0x108] ss:$16 sps:$4 sm:$0xff]  }
   0xf   :  { %652 = vmatpush1.bf16.msra.mxu0 %v4059_v7  ;;  %738 = vmatpush1.bf16.msra.mxu1 %v4092_v20  ;;  %v4095_v42 = vld [vmem:[%s5643_s1 + $0x160] ss:$16 sps:$4 sm:$0xff]   ;;  %v4129_v43 = vld [vmem:[%s5643_s1 + $0x12c] ss:$16 sps:$4 sm:$0xff]   ;;  %v4099_v44 = vld [vmem:[%s5643_s1 + $0x184] ss:$16 sps:$4 sm:$0xff]  }
  0x10   :  { %653 = vmatprep.subr.bf16.mxu0 %v4060_v10  ;;  %739 = vmatprep.subr.bf16.mxu1 %v4096_v22  ;;  %v4131_v45 = vld [vmem:[%s5643_s1 + $0x128] ss:$16 sps:$4 sm:$0xff]   ;;  %v4101_v46 = vld [vmem:[%s5643_s1 + $0x180] ss:$16 sps:$4 sm:$0xff]   ;;  %v4135_v47 = vld [vmem:[%s5643_s1 + $0x14c] ss:$16 sps:$4 sm:$0xff]  }
  0x11   :  { %v4105_v48 = vld [vmem:[%s5643_s1 + $0x1a4] ss:$16 sps:$4 sm:$0xff]   ;;  %v4137_v49 = vld [vmem:[%s5643_s1 + $0x148] ss:$16 sps:$4 sm:$0xff]   ;;  %v4107_v50 = vld [vmem:[%s5643_s1 + $0x1a0] ss:$16 sps:$4 sm:$0xff]  }
  0x12   :  { %v4141_v51 = vld [vmem:[%s5643_s1 + $0x16c] ss:$16 sps:$4 sm:$0xff]   ;;  %v4111_v52 = vld [vmem:[%s5643_s1 + $0x1c4] ss:$16 sps:$4 sm:$0xff]   ;;  %v4143_v53 = vld [vmem:[%s5643_s1 + $0x168] ss:$16 sps:$4 sm:$0xff]  }
  0x13   :  { %654 = vmatpush1.bf16.msra.mxu0 %v4062_v13  ;;  %740 = vmatpush1.bf16.msra.mxu1 %v4098_v24  ;;  %v4113_v54 = vld [vmem:[%s5643_s1 + $0x1c0] ss:$16 sps:$4 sm:$0xff]   ;;  %v4147_v55 = vld [vmem:[%s5643_s1 + $0x18c] ss:$16 sps:$4 sm:$0xff]   ;;  %v4117_v56 = vld [vmem:[%s5643_s1 + $0x1e4] ss:$16 sps:$4 sm:$0xff]  }
  0x14   :  { %655 = vmatprep.subr.bf16.mxu0 %v4063_v14  ;;  %741 = vmatprep.subr.bf16.mxu1 %v4102_v26  ;;  %v4149_v57 = vld [vmem:[%s5643_s1 + $0x188] ss:$16 sps:$4 sm:$0xff]   ;;  %v4119_v58 = vld [vmem:[%s5643_s1 + $0x1e0] ss:$16 sps:$4 sm:$0xff]   ;;  %v4153_v59 = vld [vmem:[%s5643_s1 + $0x1ac] ss:$16 sps:$4 sm:$0xff]  }
  0x15   :  { %v4128_v60 = vld [vmem:[%s5643_s1 + $0x204] ss:$16 sps:$4 sm:$0xff]   ;;  %v4123_v61 = vld [vmem:[%s5644_s0] ss:$12 sps:$4 sm:$0xff]   ;;  %v4155_v62 = vld [vmem:[%s5643_s1 + $0x1a8] ss:$16 sps:$4 sm:$0xff]  }
  0x16   :  { %v4126_v63 = vld [vmem:[%s5643_s1 + $0x200] ss:$16 sps:$4 sm:$0xff]   ;;  %v4159_v0 = vld [vmem:[%s5643_s1 + $0x1cc] ss:$16 sps:$4 sm:$0xff]   ;;  %v4134_v1 = vld [vmem:[%s5643_s1 + $0x224] ss:$16 sps:$4 sm:$0xff]  }
  0x17   :  { %656 = vmatpush1.bf16.msra.mxu0 %v4065_v17  ;;  %742 = vmatpush1.bf16.msra.mxu1 %v4104_v28  ;;  %v4161_v2 = vld [vmem:[%s5643_s1 + $0x1c8] ss:$16 sps:$4 sm:$0xff]   ;;  %v4132_v3 = vld [vmem:[%s5643_s1 + $0x220] ss:$16 sps:$4 sm:$0xff]   ;;  %v4165_v4 = vld [vmem:[%s5643_s1 + $0x1ec] ss:$16 sps:$4 sm:$0xff]  }
  0x18   :  { %657 = vmatprep.subr.bf16.mxu0 %v4066_v19  ;;  %743 = vmatprep.subr.bf16.mxu1 %v4108_v30  ;;  %v4140_v5 = vld [vmem:[%s5643_s1 + $0x244] ss:$16 sps:$4 sm:$0xff]   ;;  %v4268_v6 = vmov 0   ;;  %v4167_v7 = vld [vmem:[%s5643_s1 + $0x1e8] ss:$16 sps:$4 sm:$0xff]  }
  0x19   :  { %v4138_v8 = vld [vmem:[%s5643_s1 + $0x240] ss:$16 sps:$4 sm:$0xff]   ;;  %v4173_v9 = vld [vmem:[%s5643_s1 + $0x20c] ss:$16 sps:$4 sm:$0xff]   ;;  %v4146_v10 = vld [vmem:[%s5643_s1 + $0x264] ss:$16 sps:$4 sm:$0xff]  }
  0x1a   :  { %v4171_v11 = vld [vmem:[%s5643_s1 + $0x208] ss:$16 sps:$4 sm:$0xff]   ;;  %v4144_v12 = vld [vmem:[%s5643_s1 + $0x260] ss:$16 sps:$4 sm:$0xff]   ;;  %v4177_v13 = vld [vmem:[%s5643_s1 + $0x22c] ss:$16 sps:$4 sm:$0xff]  }
  0x1b   :  { %658 = vmatpush1.bf16.msra.mxu0 %v4068_v21  ;;  %744 = vmatpush1.bf16.msra.mxu1 %v4110_v32  ;;  %v4152_v14 = vld [vmem:[%s5643_s1 + $0x284] ss:$16 sps:$4 sm:$0xff]   ;;  %v4175_v15 = vld [vmem:[%s5643_s1 + $0x228] ss:$16 sps:$4 sm:$0xff]   ;;  %v4150_v16 = vld [vmem:[%s5643_s1 + $0x280] ss:$16 sps:$4 sm:$0xff]  }
  0x1c   :  { %659 = vmatprep.subr.bf16.mxu0 %v4069_v23  ;;  %745 = vmatprep.subr.bf16.mxu1 %v4114_v35  ;;  %v4180_v17 = vld [vmem:[%s5643_s1 + $0x24c] ss:$16 sps:$4 sm:$0xff]   ;;  %v4158_v18 = vld [vmem:[%s5643_s1 + $0x2a4] ss:$16 sps:$4 sm:$0xff]   ;;  %v4178_v19 = vld [vmem:[%s5643_s1 + $0x248] ss:$16 sps:$4 sm:$0xff]  }
  0x1d   :  { %v4156_v20 = vld [vmem:[%s5643_s1 + $0x2a0] ss:$16 sps:$4 sm:$0xff]   ;;  %v4183_v21 = vld [vmem:[%s5643_s1 + $0x26c] ss:$16 sps:$4 sm:$0xff]   ;;  %v4164_v22 = vld [vmem:[%s5643_s1 + $0x2c4] ss:$16 sps:$4 sm:$0xff]  }
  0x1e   :  { %v4181_v23 = vld [vmem:[%s5643_s1 + $0x268] ss:$16 sps:$4 sm:$0xff]   ;;  %v4162_v24 = vld [vmem:[%s5643_s1 + $0x2c0] ss:$16 sps:$4 sm:$0xff]   ;;  %v4170_v26 = vld [vmem:[%s5643_s1 + $0x2e4] ss:$16 sps:$4 sm:$0xff]  }
  0x1f   :  { %660 = vmatpush1.bf16.msra.mxu0 %v4071_v25  ;;  %746 = vmatpush1.bf16.msra.mxu1 %v4116_v37  ;;  %v4186_v25 = vld [vmem:[%s5643_s1 + $0x28c] ss:$16 sps:$4 sm:$0xff]   ;;  %v833_v28 = vld [vmem:[%s5645_s3 + $0x20] sm:$0xff]  ;;  %v4174_v35 = vld [vmem:[%s5644_s0 + $0x8] ss:$12 sps:$4 sm:$0xff]  }
  0x20   :  { %661 = vmatprep.subr.bf16.mxu0 %v4075_v27  ;;  %747 = vmatprep.subr.bf16.mxu1 %v4120_v39  ;;  %v829_v27 = vld [vmem:[%s5645_s3] sm:$0xff]  ;;  %v4192_v37 = vld [vmem:[%s5643_s1 + $0x2cc] ss:$16 sps:$4 sm:$0xff]  }
  0x21   :  { %v4168_v30 = vld [vmem:[%s5643_s1 + $0x2e0] ss:$16 sps:$4 sm:$0xff]   ;;  %v3591_v32 = vcombine.high %v829_v27, %v833_v28 }
  0x22   :  { %v837_v33 = vld [vmem:[%s5645_s3 + $0x40] sm:$0xff] }
  0x23   :  { %662 = vmatpush1.bf16.msra.mxu0 %v4077_v29  ;;  %748 = vmatpush1.bf16.msra.mxu1 %v4122_v41  ;;  %v4184_v29 = vld [vmem:[%s5643_s1 + $0x288] ss:$16 sps:$4 sm:$0xff]   ;;  %v849_v41 = vld [vmem:[%s5645_s3 + $0xa0] sm:$0xff] }
  0x24   :  { %663 = vmatprep.subr.bf16.mxu0 %v4081_v31  ;;  %749 = vmatprep.subr.bf16.mxu1 %v4129_v43  ;;  %v4189_v31 = vld [vmem:[%s5643_s1 + $0x2ac] ss:$16 sps:$4 sm:$0xff]  }
  0x25   :  { %v4195_v43 = vld [vmem:[%s5643_s1 + $0x2ec] ss:$16 sps:$4 sm:$0xff]  }
  0x27   :  { %664 = vmatpush1.bf16.msra.mxu0 %v4083_v34  ;;  %750 = vmatpush1.bf16.msra.mxu1 %v4131_v45  ;;  %v841_v34 = vld [vmem:[%s5645_s3 + $0x60] sm:$0xff]  ;;  %v830_v45 = vld [vmem:[%s5645_s3 + $0x8] sm:$0xff] }
  0x28   :  { %665 = vmatprep.subr.bf16.mxu0 %v4087_v36  ;;  %751 = vmatprep.subr.bf16.mxu1 %v4135_v47  ;;  %v4187_v36 = vld [vmem:[%s5643_s1 + $0x2a8] ss:$16 sps:$4 sm:$0xff]   ;;  %v3599_v39 = vcombine.high %v837_v33, %v841_v34 }
  0x2b   :  { %666 = vmatpush1.bf16.msra.mxu0 %v4089_v38  ;;  %752 = vmatpush1.bf16.msra.mxu1 %v4137_v49  ;;  %v3590_v38 = vcombine.low %v829_v27, %v833_v28  ;;  %v857_v49 = vld [vmem:[%s5645_s3 + $0xe0] sm:$0xff] }
  0x2c   :  { %667 = vmatprep.subr.bf16.mxu0 %v4093_v40  ;;  %753 = vmatprep.subr.bf16.mxu1 %v4141_v51  ;;  %v845_v40 = vld [vmem:[%s5645_s3 + $0x80] sm:$0xff] }
  0x2d   :  { %v3607_v47 = vcombine.high %v845_v40, %v849_v41 }
  0x2f   :  { %668 = vmatpush1.bf16.msra.mxu0 %v4095_v42  ;;  %754 = vmatpush1.bf16.msra.mxu1 %v4143_v53  ;;  %v4190_v42 = vld [vmem:[%s5643_s1 + $0x2c8] ss:$16 sps:$4 sm:$0xff]  }
  0x30   :  { %669 = vmatprep.subr.bf16.mxu0 %v4099_v44  ;;  %755 = vmatprep.subr.bf16.mxu1 %v4147_v55  ;;  %v3598_v44 = vcombine.low %v837_v33, %v841_v34  ;;  %v838_v53 = vld [vmem:[%s5645_s3 + $0x48] sm:$0xff]  ;;  %v905_v33 = vld [vmem:[%s5645_s3 + $0x260] sm:$0xff] }
  0x33   :  { %670 = vmatpush1.bf16.msra.mxu0 %v4101_v46  ;;  %756 = vmatpush1.bf16.msra.mxu1 %v4149_v57  ;;  %v834_v46 = vld [vmem:[%s5645_s3 + $0x28] sm:$0xff]  ;;  %v865_v57 = vld [vmem:[%s5645_s3 + $0x120] sm:$0xff] }
  0x34   :  { %671 = vmatprep.subr.bf16.mxu0 %v4105_v48  ;;  %757 = vmatprep.subr.bf16.mxu1 %v4153_v59  ;;  %v853_v48 = vld [vmem:[%s5645_s3 + $0xc0] sm:$0xff]  ;;  %v3593_v51 = vcombine.high %v830_v45, %v834_v46 }
  0x35   :  { %v3615_v55 = vcombine.high %v853_v48, %v857_v49 }
  0x37   :  { %672 = vmatpush1.bf16.msra.mxu0 %v4107_v50  ;;  %758 = vmatpush1.bf16.msra.mxu1 %v4155_v62  ;;  %v4193_v50 = vld [vmem:[%s5643_s1 + $0x2e8] ss:$16 sps:$4 sm:$0xff]  }
  0x38   :  { %673 = vmatprep.subr.bf16.mxu0 %v4111_v52  ;;  %759 = vmatprep.subr.bf16.mxu1 %v4159_v0  ;;  %v3606_v52 = vcombine.low %v845_v40, %v849_v41  ;;  %v850_v62 = vld [vmem:[%s5645_s3 + $0xa8] sm:$0xff]  ;;  %v869_v0 = vld [vmem:[%s5645_s3 + $0x140] sm:$0xff] }
  0x39   :  { %v909_v40 = vld [vmem:[%s5645_s3 + $0x280] sm:$0xff] }
  0x3a   :  { %v913_v41 = vld [vmem:[%s5645_s3 + $0x2a0] sm:$0xff] }
  0x3b   :  { %674 = vmatpush1.bf16.msra.mxu0 %v4113_v54  ;;  %760 = vmatpush1.bf16.msra.mxu1 %v4161_v2  ;;  %v842_v54 = vld [vmem:[%s5645_s3 + $0x68] sm:$0xff] }
  0x3c   :  { %675 = vmatprep.subr.bf16.mxu0 %v4117_v56  ;;  %761 = vmatprep.subr.bf16.mxu1 %v4165_v4  ;;  %v861_v56 = vld [vmem:[%s5645_s3 + $0x100] sm:$0xff]  ;;  %v3601_v59 = vcombine.high %v838_v53, %v842_v54  ;;  %v3600_v2 = vcombine.low %v838_v53, %v842_v54  ;;  %v902_v53 = vld [vmem:[%s5645_s3 + $0x248] sm:$0xff] }
  0x3d   :  { %v3622_v4 = vcombine.low %v861_v56, %v865_v57  ;;  %v906_v54 = vld [vmem:[%s5645_s3 + $0x268] sm:$0xff] }
  0x3f   :  { %676 = vmatpush1.bf16.msra.mxu0 %v4119_v58  ;;  %762 = vmatpush1.bf16.msra.mxu1 %v4167_v7  ;;  %v3592_v58 = vcombine.low %v830_v45, %v834_v46  ;;  %v894_v45 = vld [vmem:[%s5645_s3 + $0x208] sm:$0xff] }
  0x40   :  { %688 = vmatprep.subr.bf16.mxu0 %v4128_v60  ;;  %774 = vmatprep.subr.bf16.mxu1 %v4173_v9  ;;  %v3614_v60 = vcombine.low %v853_v48, %v857_v49  ;;  %v881_v9 = vld [vmem:[%s5645_s3 + $0x1a0] sm:$0xff]  ;;  %v898_v46 = vld [vmem:[%s5645_s3 + $0x228] sm:$0xff] }
  0x41   :  { %v917_v48 = vld [vmem:[%s5645_s3 + $0x2c0] sm:$0xff] }
  0x42   :  { %678 = vmatmul.mubr.bf16.vlgmr.msra.gmra.mrb[0].mxu0 %v4123_v61  ;;  %764 = vmatmul.mubr.bf16.vlgmr.msra.gmra.mrb[0].mxu1 %v4123_v61  ;;  %v846_v61 = vld [vmem:[%s5645_s3 + $0x88] sm:$0xff]  ;;  %v921_v49 = vld [vmem:[%s5645_s3 + $0x2e0] sm:$0xff] }
  0x43   :  { %689 = vmatpush1.bf16.msra.mxu0 %v4126_v63  ;;  %720 = vmatprep.mubr.bf16.mxu0 %v4268_v6  ;;  %v3623_v63 = vcombine.high %v861_v56, %v865_v57  ;;  %v925_v56 = vld [vmem:[%s5645_s3 + $0x300] sm:$0xff] }
  0x44   :  { %690 = vmatprep.subr.bf16.mxu0 %v4134_v1  ;;  %775 = vmatpush1.bf16.msra.mxu1 %v4171_v11  ;;  %v873_v1 = vld [vmem:[%s5645_s3 + $0x160] sm:$0xff] }
  0x45   :  { %806 = vmatprep.mubr.bf16.mxu1 %v4268_v6  ;;  %776 = vmatprep.subr.bf16.mxu1 %v4177_v13  ;;  %v858_v6 = vld [vmem:[%s5645_s3 + $0xe8] sm:$0xff]  ;;  %v3631_v7 = vcombine.high %v869_v0, %v873_v1  ;;  %v929_v57 = vld [vmem:[%s5645_s3 + $0x320] sm:$0xff] }
  0x46   :  { %v862_v13 = vld [vmem:[%s5645_s3 + $0x108] sm:$0xff] }
  0x47   :  { %691 = vmatpush1.bf16.msra.mxu0 %v4132_v3  ;;  %v3609_v3 = vcombine.high %v846_v61, %v850_v62 }
  0x48   :  { %692 = vmatprep.subr.bf16.mxu0 %v4140_v5  ;;  %777 = vmatpush1.bf16.msra.mxu1 %v4175_v15  ;;  %v854_v5 = vld [vmem:[%s5645_s3 + $0xc8] sm:$0xff] }
  0x49   :  { %778 = vmatprep.subr.bf16.mxu1 %v4180_v17  ;;  %v3617_v11 = vcombine.high %v854_v5, %v858_v6  ;;  %v889_v17 = vld [vmem:[%s5645_s3 + $0x1e0] sm:$0xff] }
  0x4b   :  { %693 = vmatpush1.bf16.msra.mxu0 %v4138_v8  ;;  %v877_v8 = vld [vmem:[%s5645_s3 + $0x180] sm:$0xff] }
  0x4c   :  { %694 = vmatprep.subr.bf16.mxu0 %v4146_v10  ;;  %779 = vmatpush1.bf16.msra.mxu1 %v4178_v19  ;;  %v3608_v10 = vcombine.low %v846_v61, %v850_v62  ;;  %v3639_v15 = vcombine.high %v877_v8, %v881_v9  ;;  %v910_v61 = vld [vmem:[%s5645_s3 + $0x288] sm:$0xff] }
  0x4d   :  { %780 = vmatprep.subr.bf16.mxu1 %v4183_v21  ;;  %v870_v21 = vld [vmem:[%s5645_s3 + $0x148] sm:$0xff] }
  0x4e   :  { %v914_v62 = vld [vmem:[%s5645_s3 + $0x2a8] sm:$0xff] }
  0x4f   :  { %695 = vmatpush1.bf16.msra.mxu0 %v4144_v12  ;;  %v3630_v12 = vcombine.low %v869_v0, %v873_v1  ;;  %v933_v0 = vld [vmem:[%s5645_s3 + $0x340] sm:$0xff] }
  0x50   :  { %696 = vmatprep.subr.bf16.mxu0 %v4152_v14  ;;  %781 = vmatpush1.bf16.msra.mxu1 %v4181_v23  ;;  %v866_v14 = vld [vmem:[%s5645_s3 + $0x128] sm:$0xff]  ;;  %v937_v1 = vld [vmem:[%s5645_s3 + $0x360] sm:$0xff] }
  0x51   :  { %782 = vmatprep.subr.bf16.mxu1 %v4186_v25  ;;  %v3625_v19 = vcombine.high %v862_v13, %v866_v14  ;;  %v897_v25 = vld [vmem:[%s5645_s3 + $0x220] sm:$0xff] }
  0x53   :  { %697 = vmatpush1.bf16.msra.mxu0 %v4150_v16  ;;  %v885_v16 = vld [vmem:[%s5645_s3 + $0x1c0] sm:$0xff] }
  0x54   :  { %698 = vmatprep.subr.bf16.mxu0 %v4158_v18  ;;  %783 = vmatpush1.bf16.msra.mxu1 %v4184_v29  ;;  %v3616_v18 = vcombine.low %v854_v5, %v858_v6  ;;  %v3647_v23 = vcombine.high %v885_v16, %v889_v17  ;;  %v3646_v28 = vcombine.low %v885_v16, %v889_v17  ;;  %v878_v29 = vld [vmem:[%s5645_s3 + $0x188] sm:$0xff] }
  0x55   :  { %784 = vmatprep.subr.bf16.mxu1 %v4189_v31  ;;  %v918_v5 = vld [vmem:[%s5645_s3 + $0x2c8] sm:$0xff] }
  0x56   :  { %v922_v6 = vld [vmem:[%s5645_s3 + $0x2e8] sm:$0xff] }
  0x57   :  { %699 = vmatpush1.bf16.msra.mxu0 %v4156_v20  ;;  %v3638_v20 = vcombine.low %v877_v8, %v881_v9  ;;  %v3672_v8 = vcombine.low %v910_v61, %v914_v62  ;;  %v3681_v9 = vcombine.high %v918_v5, %v922_v6  ;;  %v938_v16 = vld [vmem:[%s5645_s3 + $0x368] sm:$0xff] }
  0x58   :  { %700 = vmatprep.subr.bf16.mxu0 %v4164_v22  ;;  %785 = vmatpush1.bf16.msra.mxu1 %v4187_v36  ;;  %v874_v22 = vld [vmem:[%s5645_s3 + $0x168] sm:$0xff] }
  0x59   :  { %786 = vmatprep.subr.bf16.mxu1 %v4192_v37  ;;  %v3633_v27 = vcombine.high %v870_v21, %v874_v22  ;;  %v3632_v34 = vcombine.low %v870_v21, %v874_v22  ;;  %v886_v37 = vld [vmem:[%s5645_s3 + $0x1c8] sm:$0xff]  ;;  %v945_v21 = vld [vmem:[%s5645_s3 + $0x3a0] sm:$0xff] }
  0x5a   :  { %v942_v22 = vld [vmem:[%s5645_s3 + $0x388] sm:$0xff] }
  0x5b   :  { %701 = vmatpush1.bf16.msra.mxu0 %v4162_v24  ;;  %v893_v24 = vld [vmem:[%s5645_s3 + $0x200] sm:$0xff] }
  0x5c   :  { %702 = vmatprep.subr.bf16.mxu0 %v4170_v26  ;;  %787 = vmatpush1.bf16.msra.mxu1 %v4190_v42  ;;  %v3624_v26 = vcombine.low %v862_v13, %v866_v14  ;;  %v3655_v31 = vcombine.high %v893_v24, %v897_v25  ;;  %v3654_v36 = vcombine.low %v893_v24, %v897_v25  ;;  %v946_v24 = vld [vmem:[%s5645_s3 + $0x3a8] sm:$0xff] }
  0x5d   :  { %788 = vmatprep.subr.bf16.mxu1 %v4195_v43  ;;  %v3680_v13 = vcombine.low %v918_v5, %v922_v6 }
  0x5f   :  { %703 = vmatpush1.bf16.msra.mxu0 %v4168_v30  ;;  %v882_v30 = vld [vmem:[%s5645_s3 + $0x1a8] sm:$0xff] }
  0x60   :  { %2407 = vmatprep.subr.bf16.mxu0 %v3591_v32  ;;  %789 = vmatpush1.bf16.msra.mxu1 %v4193_v50  ;;  %v901_v32 = vld [vmem:[%s5645_s3 + $0x240] sm:$0xff]  ;;  %v3640_v42 = vcombine.low %v878_v29, %v882_v30 }
  0x61   :  { %2493 = vmatprep.subr.bf16.mxu1 %v3593_v51  ;;  %v3657_v51 = vcombine.high %v894_v45, %v898_v46 }
  0x62   :  { %721 = vmatmul.mubr.bf16.vlgmr.msra.gmra.mrb[0].mxu0 %v4174_v35 }
  0x63   :  { %2408 = vmatpush1.bf16.msra.mxu0 %v3590_v38  ;;  %807 = vmatmul.mubr.bf16.vlgmr.msra.gmra.mrb[0].mxu1 %v4174_v35  ;;  %v3641_v35 = vcombine.high %v878_v29, %v882_v30  ;;  %v890_v38 = vld [vmem:[%s5645_s3 + $0x1e8] sm:$0xff]  ;;  %v953_v29 = vld [vmem:[%s5645_s3 + $0x3e0] sm:$0xff] }
  0x64   :  { %2409 = vmatprep.subr.bf16.mxu0 %v3599_v39  ;;  %2494 = vmatpush1.bf16.msra.mxu1 %v3592_v58  ;;  %v3663_v39 = vcombine.high %v901_v32, %v905_v33  ;;  %v3649_v43 = vcombine.high %v886_v37, %v890_v38  ;;  %v3648_v50 = vcombine.low %v886_v37, %v890_v38  ;;  %v950_v30 = vld [vmem:[%s5645_s3 + $0x3c8] sm:$0xff]  ;;  %v961_v37 = vld [vmem:[%s5645_s3 + $0x420] sm:$0xff] }
  0x65   :  { %2495 = vmatprep.subr.bf16.mxu1 %v3601_v59  ;;  %v3656_v58 = vcombine.low %v894_v45, %v898_v46  ;;  %v3665_v59 = vcombine.high %v902_v53, %v906_v54  ;;  %v958_v38 = vld [vmem:[%s5645_s3 + $0x408] sm:$0xff] }
  0x67   :  { %2410 = vmatpush1.bf16.msra.mxu0 %v3598_v44  ;;  %v3662_v44 = vcombine.low %v901_v32, %v905_v33  ;;  %v954_v32 = vld [vmem:[%s5645_s3 + $0x3e8] sm:$0xff] }
  0x68   :  { %2411 = vmatprep.subr.bf16.mxu0 %v3607_v47  ;;  %2496 = vmatpush1.bf16.msra.mxu1 %v3600_v2  ;;  %v3671_v47 = vcombine.high %v909_v40, %v913_v41  ;;  %v3664_v2 = vcombine.low %v902_v53, %v906_v54 }
  0x69   :  { %2497 = vmatprep.subr.bf16.mxu1 %v3609_v3  ;;  %v3673_v3 = vcombine.high %v910_v61, %v914_v62  ;;  %v965_v62 = vld [vmem:[%s5645_s3 + $0x440] sm:$0xff] }
  0x6b   :  { %2412 = vmatpush1.bf16.msra.mxu0 %v3606_v52  ;;  %v3670_v52 = vcombine.low %v909_v40, %v913_v41  ;;  %v962_v40 = vld [vmem:[%s5645_s3 + $0x428] sm:$0xff] }
  0x6c   :  { %2413 = vmatprep.subr.bf16.mxu0 %v3615_v55  ;;  %2498 = vmatpush1.bf16.msra.mxu1 %v3608_v10  ;;  %v3679_v55 = vcombine.high %v917_v48, %v921_v49  ;;  %v3694_v10 = vcombine.low %v933_v0, %v937_v1 }
  0x6d   :  { %2499 = vmatprep.subr.bf16.mxu1 %v3617_v11  ;;  %v926_v11 = vld [vmem:[%s5645_s3 + $0x308] sm:$0xff] }
  0x6f   :  { %2414 = vmatpush1.bf16.msra.mxu0 %v3614_v60  ;;  %v3678_v60 = vcombine.low %v917_v48, %v921_v49 }
  0x70   :  { %2415 = vmatprep.subr.bf16.mxu0 %v3623_v63  ;;  %2500 = vmatpush1.bf16.msra.mxu1 %v3616_v18  ;;  %v3687_v63 = vcombine.high %v925_v56, %v929_v57 }
  0x71   :  { %2501 = vmatprep.subr.bf16.mxu1 %v3625_v19 }
  0x73   :  { %2416 = vmatpush1.bf16.msra.mxu0 %v3622_v4  ;;  %v3686_v4 = vcombine.low %v925_v56, %v929_v57 }
  0x74   :  { %2417 = vmatprep.subr.bf16.mxu0 %v3631_v7  ;;  %2502 = vmatpush1.bf16.msra.mxu1 %v3624_v26  ;;  %v3695_v7 = vcombine.high %v933_v0, %v937_v1  ;;  %v3704_v26 = vcombine.low %v942_v22, %v946_v24 }
  0x75   :  { %2503 = vmatprep.subr.bf16.mxu1 %v3633_v27  ;;  %v3705_v27 = vcombine.high %v942_v22, %v946_v24  ;;  %v981_v22 = vld [vmem:[%s5645_s3 + $0x4c0] sm:$0xff] }
  0x77   :  { %2418 = vmatpush1.bf16.msra.mxu0 %v3630_v12  ;;  %v930_v12 = vld [vmem:[%s5645_s3 + $0x328] sm:$0xff] }
  0x78   :  { %2419 = vmatprep.subr.bf16.mxu0 %v3639_v15  ;;  %2504 = vmatpush1.bf16.msra.mxu1 %v3632_v34  ;;  %v3689_v14 = vcombine.high %v926_v11, %v930_v12  ;;  %v934_v15 = vld [vmem:[%s5645_s3 + $0x348] sm:$0xff]  ;;  %v3688_v17 = vcombine.low %v926_v11, %v930_v12  ;;  %v3712_v34 = vcombine.low %v950_v30, %v954_v32  ;;  %v977_v12 = vld [vmem:[%s5645_s3 + $0x4a0] sm:$0xff] }
  0x79   :  { %2505 = vmatprep.subr.bf16.mxu1 %v3641_v35  ;;  %v3697_v18 = vcombine.high %v934_v15, %v938_v16  ;;  %v3696_v19 = vcombine.low %v934_v15, %v938_v16  ;;  %v3713_v35 = vcombine.high %v950_v30, %v954_v32 }
  0x7b   :  { %2420 = vmatpush1.bf16.msra.mxu0 %v3638_v20  ;;  %v941_v20 = vld [vmem:[%s5645_s3 + $0x380] sm:$0xff] }
  0x7c   :  { %2421 = vmatprep.subr.bf16.mxu0 %v3647_v23  ;;  %2506 = vmatpush1.bf16.msra.mxu1 %v3640_v42  ;;  %v3703_v23 = vcombine.high %v941_v20, %v945_v21  ;;  %v3702_v25 = vcombine.low %v941_v20, %v945_v21  ;;  %v3720_v42 = vcombine.low %v958_v38, %v962_v40 }
  0x7d   :  { %2507 = vmatprep.subr.bf16.mxu1 %v3649_v43  ;;  %v3721_v43 = vcombine.high %v958_v38, %v962_v40  ;;  %v989_v38 = vld [vmem:[%s5645_s3 + $0x500] sm:$0xff] }
  0x7e   :  { %v993_v40 = vld [vmem:[%s5645_s3 + $0x520] sm:$0xff] }
  0x7f   :  { %2422 = vmatpush1.bf16.msra.mxu0 %v3646_v28  ;;  %v949_v28 = vld [vmem:[%s5645_s3 + $0x3c0] sm:$0xff] }
  0x80   :  { %2423 = vmatprep.subr.bf16.mxu0 %v3655_v31  ;;  %2508 = vmatpush1.bf16.msra.mxu1 %v3648_v50  ;;  %v3711_v31 = vcombine.high %v949_v28, %v953_v29  ;;  %v3710_v33 = vcombine.low %v949_v28, %v953_v29 }
  0x81   :  { %2509 = vmatprep.subr.bf16.mxu1 %v3657_v51 }
  0x83   :  { %2424 = vmatpush1.bf16.msra.mxu0 %v3654_v36  ;;  %v957_v36 = vld [vmem:[%s5645_s3 + $0x400] sm:$0xff] }
  0x84   :  { %2425 = vmatprep.subr.bf16.mxu0 %v3663_v39  ;;  %2510 = vmatpush1.bf16.msra.mxu1 %v3656_v58  ;;  %v3719_v39 = vcombine.high %v957_v36, %v961_v37  ;;  %v3718_v41 = vcombine.low %v957_v36, %v961_v37 }
  0x85   :  { %2511 = vmatprep.subr.bf16.mxu1 %v3665_v59 }
  0x87   :  { %2426 = vmatpush1.bf16.msra.mxu0 %v3662_v44  ;;  %v129_v44 = vlaneseq }
  0x88   :  { %2427 = vmatprep.subr.bf16.mxu0 %v3671_v47  ;;  %2512 = vmatpush1.bf16.msra.mxu1 %v3664_v2  ;;  %v127_v47 = vld [vmem:[%s5646_s2] sm:$0xf] }
  0x89   :  { %2513 = vmatprep.subr.bf16.mxu1 %v3673_v3  ;;  %v4811_v45 = vshrl.u32 %v129_v44, 7  ;;  %v969_v2 = vld [vmem:[%s5645_s3 + $0x460] sm:$0xff]  ;;  %v966_v3 = vld [vmem:[%s5645_s3 + $0x448] sm:$0xff] }
  0x8a   :  { %v3726_v16 = vcombine.low %v965_v62, %v969_v2 }
  0x8b   :  { %2428 = vmatpush1.bf16.msra.mxu0 %v3670_v52  ;;  %v131_v46 = vsub.s32 0, %v4811_v45  ;;  %v135_v48 = vsub.s32 1, %v4811_v45  ;;  %v139_v59 = vsub.s32 2, %v4811_v45 }
  0x8c   :  { %2429 = vmatprep.subr.bf16.mxu0 %v3679_v55  ;;  %2514 = vmatpush1.bf16.msra.mxu1 %v3672_v8  ;;  %v3727_v8 = vcombine.high %v965_v62, %v969_v2  ;;  %v1005_v62 = vld [vmem:[%s5645_s3 + $0x580] sm:$0xff]  ;;  %v1010_v2 = vld [vmem:[%s5645_s3 + $0x5a8] sm:$0xff] }
  0x8d   :  { %2515 = vmatprep.subr.bf16.mxu1 %v3681_v9  ;;  %v132_v49 = vrot.slane %v127_v47, %v131_v46  ;;  %v136_v50 = vrot.slane %v127_v47, %v135_v48 }
  0x8f   :  { %2430 = vmatpush1.bf16.msra.mxu0 %v3678_v60 }
  0x90   :  { %2431 = vmatprep.subr.bf16.mxu0 %v3687_v63  ;;  %2516 = vmatpush1.bf16.msra.mxu1 %v3680_v13  ;;  %v143_v63 = vsub.s32 3, %v4811_v45  ;;  %v974_v13 = vld [vmem:[%s5645_s3 + $0x488] sm:$0xff] }
  0x91   :  { %2517 = vmatprep.subr.bf16.mxu1 %v3689_v14  ;;  %v978_v14 = vld [vmem:[%s5645_s3 + $0x4a8] sm:$0xff] }
  0x92   :  { %v144_v11 = vrot.slane %v127_v47, %v143_v63  ;;  %v3737_v21 = vcombine.high %v974_v13, %v978_v14 }
  0x93   :  { %2432 = vmatpush1.bf16.msra.mxu0 %v3686_v4  ;;  %v970_v4 = vld [vmem:[%s5645_s3 + $0x468] sm:$0xff] }
  0x94   :  { %2433 = vmatprep.subr.bf16.mxu0 %v3695_v7  ;;  %2518 = vmatpush1.bf16.msra.mxu1 %v3688_v17  ;;  %v140_v7 = vrot.slane %v127_v47, %v139_v59  ;;  %v3729_v9 = vcombine.high %v966_v3, %v970_v4  ;;  %v3728_v17 = vcombine.low %v966_v3, %v970_v4 }
  0x95   :  { %2519 = vmatprep.subr.bf16.mxu1 %v3697_v18 }
  0x97   :  { %2434 = vmatpush1.bf16.msra.mxu0 %v3694_v10  ;;  %v973_v10 = vld [vmem:[%s5645_s3 + $0x480] sm:$0xff] }
  0x98   :  { %2520 = vmatpush1.bf16.msra.mxu1 %v3696_v19  ;;  %2435 = vmatprep.subr.bf16.mxu0 %v3703_v23  ;;  %v3735_v20 = vcombine.high %v973_v10, %v977_v12 }
  0x99   :  { %2521 = vmatprep.subr.bf16.mxu1 %v3705_v27  ;;  %v986_v27 = vld [vmem:[%s5645_s3 + $0x4e8] sm:$0xff] }
  0x9b   :  { %2436 = vmatpush1.bf16.msra.mxu0 %v3702_v25  ;;  %v985_v25 = vld [vmem:[%s5645_s3 + $0x4e0] sm:$0xff] }
  0x9c   :  { %2522 = vmatpush1.bf16.msra.mxu1 %v3704_v26  ;;  %2437 = vmatprep.subr.bf16.mxu0 %v3711_v31  ;;  %v982_v26 = vld [vmem:[%s5645_s3 + $0x4c8] sm:$0xff]  ;;  %v3743_v36 = vcombine.high %v981_v22, %v985_v25 }
  0x9d   :  { %2523 = vmatprep.subr.bf16.mxu1 %v3713_v35  ;;  %v3745_v37 = vcombine.high %v982_v26, %v986_v27 }
  0x9f   :  { %2438 = vmatpush1.bf16.msra.mxu0 %v3710_v33  ;;  %v3734_v33 = vcombine.low %v973_v10, %v977_v12  ;;  %v1017_v10 = vld [vmem:[%s5645_s3 + $0x5e0] sm:$0xff]  ;;  %v1018_v12 = vld [vmem:[%s5645_s3 + $0x5e8] sm:$0xff] }
  0xa0   :  { %2524 = vmatpush1.bf16.msra.mxu1 %v3712_v34  ;;  %2450 = vmatprep.subr.bf16.mxu0 %v3719_v39  ;;  %v3736_v34 = vcombine.low %v974_v13, %v978_v14 }
  0xa1   :  { %2536 = vmatprep.subr.bf16.mxu1 %v3721_v43 }
 0x135   :  { %v722_v51 = vpop.f32.mrb[0].mxu0 }
 0x136   :  { %v3999_v52 = vadd.f32 %v722_v51, %v132_v49  ;;  %v724_v53 = vpop.f32.mrb[1].mxu0  ;;  %v808_v15 = vpop.f32.mrb[0].mxu1  ;;  %v3751_v51 = vcombine.high %v989_v38, %v993_v40 }
 0x137   :  { %v4000_v54 = vadd.f32 %v724_v53, %v136_v50  ;;  %v726_v55 = vpop.f32.mrb[2].mxu0  ;;  %v4003_v18 = vadd.f32 %v808_v15, %v140_v7  ;;  %v810_v19 = vpop.f32.mrb[1].mxu1  ;;  %v997_v53 = vld [vmem:[%s5645_s3 + $0x540] sm:$0xff] }
 0x138   :  { %v4001_v56 = vadd.f32 %v726_v55, %v132_v49  ;;  %v728_v57 = vpop.f32.mrb[3].mxu0  ;;  %v817_v60 = vmax.f32 %v3999_v52, 0.0  ;;  %v4004_v23 = vadd.f32 %v810_v19, %v144_v11  ;;  %v812_v24 = vpop.f32.mrb[2].mxu1  ;;  %v3742_v49 = vcombine.low %v981_v22, %v985_v25  ;;  %v998_v55 = vld [vmem:[%s5645_s3 + $0x548] sm:$0xff]  ;;  %v1029_v25 = vld [vmem:[%s5645_s3 + $0x640] sm:$0xff] }
 0x139   :  { %v4002_v58 = vadd.f32 %v728_v57, %v136_v50  ;;  %v818_v0 = vmax.f32 %v4000_v54, 0.0  ;;  %v819_v28 = vmax.f32 %v4003_v18, 0.0  ;;  %v4005_v29 = vadd.f32 %v812_v24, %v140_v7  ;;  %v814_v30 = vpop.f32.mrb[3].mxu1  ;;  %v1001_v54 = vld [vmem:[%s5645_s3 + $0x560] sm:$0xff]  ;;  %v1022_v19 = vld [vmem:[%s5645_s3 + $0x608] sm:$0xff] }
 0x13a   :  { %v821_v61 = vmax.f32 %v4001_v56, 0.0  ;;  %v820_v31 = vmax.f32 %v4004_v23, 0.0  ;;  %v4006_v32 = vadd.f32 %v814_v30, %v144_v11  ;;  %v3744_v50 = vcombine.low %v982_v26, %v986_v27  ;;  %v1002_v56 = vld [vmem:[%s5645_s3 + $0x568] sm:$0xff]  ;;  %v1025_v18 = vld [vmem:[%s5645_s3 + $0x620] sm:$0xff] }
 0x13b   :  { %v822_v1 = vmax.f32 %v4002_v58, 0.0  ;;  %v823_v35 = vmax.f32 %v4005_v29, 0.0  ;;  %v3750_v57 = vcombine.low %v989_v38, %v993_v40  ;;  %v3758_v3 = vcombine.low %v997_v53, %v1001_v54  ;;  %v1014_v11 = vld [vmem:[%s5645_s3 + $0x5c8] sm:$0xff]  ;;  %v1033_v26 = vld [vmem:[%s5645_s3 + $0x660] sm:$0xff] }
 0x13c   :  { %v4836_v5 = vpack.c.bf16 %v821_v61, %v817_v60  ;;  %v824_v39 = vmax.f32 %v4006_v32, 0.0  ;;  %v3759_v60 = vcombine.high %v997_v53, %v1001_v54  ;;  %v3761_v61 = vcombine.high %v998_v55, %v1002_v56  ;;  %v1030_v27 = vld [vmem:[%s5645_s3 + $0x648] sm:$0xff] }
 0x13d   :  { %v4838_v6 = vpack.c.bf16 %v822_v1, %v818_v0  ;;  %v4884_v43 = vpack.c.bf16 %v823_v35, %v819_v28  ;;  %v1009_v0 = vld [vmem:[%s5645_s3 + $0x5a0] sm:$0xff]  ;;  %v1006_v1 = vld [vmem:[%s5645_s3 + $0x588] sm:$0xff]  ;;  %v3760_v4 = vcombine.low %v998_v55, %v1002_v56  ;;  %v3776_v22 = vcombine.low %v1014_v11, %v1018_v12 }
 0x13e   :  { %v4886_v47 = vpack.c.bf16 %v824_v39, %v820_v31  ;;  %v3767_v7 = vcombine.high %v1005_v62, %v1009_v0  ;;  %v3766_v13 = vcombine.low %v1005_v62, %v1009_v0  ;;  %v3768_v14 = vcombine.low %v1006_v1, %v1010_v2  ;;  %v1034_v28 = vld [vmem:[%s5645_s3 + $0x668] sm:$0xff]  ;;  %v1053_v55 = vld [vmem:[%s5645_s3 + $0x700] sm:$0xff] }
 0x13f   :  { %2439 = vmatprep.mubr.bf16.mxu0 %v4838_v6  ;;  %2525 = vmatprep.mubr.bf16.mxu1 %v4838_v6  ;;  %v3791_v31 = vcombine.high %v1029_v25, %v1033_v26  ;;  %v3793_v32 = vcombine.high %v1030_v27, %v1034_v28  ;;  %v1038_v35 = vld [vmem:[%s5645_s3 + $0x688] sm:$0xff]  ;;  %v3792_v38 = vcombine.low %v1030_v27, %v1034_v28  ;;  %v1057_v56 = vld [vmem:[%s5645_s3 + $0x720] sm:$0xff]  ;;  %v831_v27 = vld [vmem:[%s5645_s3 + $0x10] sm:$0xff] }
 0x140   :  { %2440 = vmatmul.mubr.bf16.vlgmr.msra.gmra.mrb[4].mxu0 %v4836_v5  ;;  %2526 = vmatmul.mubr.bf16.vlgmr.msra.gmra.mrb[4].mxu1 %v4836_v5  ;;  %v3815_v62 = vcombine.high %v1053_v55, %v1057_v56  ;;  %v835_v28 = vld [vmem:[%s5645_s3 + $0x30] sm:$0xff] }
 0x141   :  { %2451 = vmatpush1.bf16.msra.mxu0 %v3718_v41  ;;  %2537 = vmatpush1.bf16.msra.mxu1 %v3720_v42  ;;  %v990_v41 = vld [vmem:[%s5645_s3 + $0x508] sm:$0xff] }
 0x142   :  { %2452 = vmatprep.subr.bf16.mxu0 %v3727_v8  ;;  %2538 = vmatprep.subr.bf16.mxu1 %v3729_v9  ;;  %v994_v42 = vld [vmem:[%s5645_s3 + $0x528] sm:$0xff]  ;;  %v3769_v8 = vcombine.high %v1006_v1, %v1010_v2  ;;  %v1013_v9 = vld [vmem:[%s5645_s3 + $0x5c0] sm:$0xff] }
 0x143   :  { %v3753_v52 = vcombine.high %v990_v41, %v994_v42  ;;  %2482 = vmatprep.mubr.bf16.mxu0 %v4886_v47  ;;  %2568 = vmatprep.mubr.bf16.mxu1 %v4886_v47  ;;  %v3752_v58 = vcombine.low %v990_v41, %v994_v42  ;;  %v3775_v15 = vcombine.high %v1013_v9, %v1017_v10  ;;  %v1045_v41 = vld [vmem:[%s5645_s3 + $0x6c0] sm:$0xff] }
 0x144   :  { %v1049_v42 = vld [vmem:[%s5645_s3 + $0x6e0] sm:$0xff] }
 0x145   :  { %2453 = vmatpush1.bf16.msra.mxu0 %v3726_v16  ;;  %2539 = vmatpush1.bf16.msra.mxu1 %v3728_v17  ;;  %v3777_v16 = vcombine.high %v1014_v11, %v1018_v12  ;;  %v1021_v17 = vld [vmem:[%s5645_s3 + $0x600] sm:$0xff]  ;;  %v3807_v53 = vcombine.high %v1045_v41, %v1049_v42 }
 0x146   :  { %2454 = vmatprep.subr.bf16.mxu0 %v3735_v20  ;;  %2540 = vmatprep.subr.bf16.mxu1 %v3737_v21  ;;  %v1026_v20 = vld [vmem:[%s5645_s3 + $0x628] sm:$0xff]  ;;  %v3774_v21 = vcombine.low %v1013_v9, %v1017_v10  ;;  %v3783_v23 = vcombine.high %v1021_v17, %v1025_v18  ;;  %v3782_v29 = vcombine.low %v1021_v17, %v1025_v18  ;;  %v1061_v1 = vld [vmem:[%s5645_s3 + $0x740] sm:$0xff] }
 0x147   :  { %v3785_v24 = vcombine.high %v1022_v19, %v1026_v20  ;;  %v3784_v30 = vcombine.low %v1022_v19, %v1026_v20  ;;  %v1065_v2 = vld [vmem:[%s5645_s3 + $0x760] sm:$0xff] }
 0x148   :  { %v3823_v9 = vcombine.high %v1061_v1, %v1065_v2  ;;  %v1069_v11 = vld [vmem:[%s5645_s3 + $0x780] sm:$0xff] }
 0x149   :  { %2455 = vmatpush1.bf16.msra.mxu0 %v3734_v33  ;;  %2541 = vmatpush1.bf16.msra.mxu1 %v3736_v34  ;;  %v1037_v33 = vld [vmem:[%s5645_s3 + $0x680] sm:$0xff] }
 0x14a   :  { %2456 = vmatprep.subr.bf16.mxu0 %v3743_v36  ;;  %2542 = vmatprep.subr.bf16.mxu1 %v3745_v37  ;;  %v1041_v34 = vld [vmem:[%s5645_s3 + $0x6a0] sm:$0xff]  ;;  %v1042_v36 = vld [vmem:[%s5645_s3 + $0x6a8] sm:$0xff]  ;;  %v3790_v37 = vcombine.low %v1029_v25, %v1033_v26 }
 0x14b   :  { %v3799_v39 = vcombine.high %v1037_v33, %v1041_v34  ;;  %v3801_v40 = vcombine.high %v1038_v35, %v1042_v36  ;;  %v1073_v12 = vld [vmem:[%s5645_s3 + $0x7a0] sm:$0xff] }
 0x14c   :  { %v3831_v17 = vcombine.high %v1069_v11, %v1073_v12  ;;  %v1077_v19 = vld [vmem:[%s5645_s3 + $0x7c0] sm:$0xff] }
 0x14d   :  { %2457 = vmatpush1.bf16.msra.mxu0 %v3742_v49  ;;  %2543 = vmatpush1.bf16.msra.mxu1 %v3744_v50  ;;  %v1046_v49 = vld [vmem:[%s5645_s3 + $0x6c8] sm:$0xff]  ;;  %v1081_v20 = vld [vmem:[%s5645_s3 + $0x7e0] sm:$0xff] }
 0x14e   :  { %2458 = vmatprep.subr.bf16.mxu0 %v3751_v51  ;;  %2544 = vmatprep.subr.bf16.mxu1 %v3753_v52  ;;  %v1050_v50 = vld [vmem:[%s5645_s3 + $0x6e8] sm:$0xff]  ;;  %v3798_v51 = vcombine.low %v1037_v33, %v1041_v34  ;;  %v3800_v52 = vcombine.low %v1038_v35, %v1042_v36  ;;  %v3839_v25 = vcombine.high %v1077_v19, %v1081_v20  ;;  %v839_v35 = vld [vmem:[%s5645_s3 + $0x50] sm:$0xff] }
 0x14f   :  { %v3809_v54 = vcombine.high %v1046_v49, %v1050_v50  ;;  %v3595_v33 = vcombine.high %v831_v27, %v835_v28  ;;  %v843_v36 = vld [vmem:[%s5645_s3 + $0x70] sm:$0xff] }
 0x151   :  { %2459 = vmatpush1.bf16.msra.mxu0 %v3750_v57  ;;  %2545 = vmatpush1.bf16.msra.mxu1 %v3752_v58  ;;  %v1054_v57 = vld [vmem:[%s5645_s3 + $0x708] sm:$0xff] }
 0x152   :  { %2460 = vmatprep.subr.bf16.mxu0 %v3759_v60  ;;  %2546 = vmatprep.subr.bf16.mxu1 %v3761_v61  ;;  %v1058_v58 = vld [vmem:[%s5645_s3 + $0x728] sm:$0xff]  ;;  %v3806_v60 = vcombine.low %v1045_v41, %v1049_v42  ;;  %v3808_v61 = vcombine.low %v1046_v49, %v1050_v50  ;;  %v3603_v41 = vcombine.high %v839_v35, %v843_v36  ;;  %v847_v49 = vld [vmem:[%s5645_s3 + $0x90] sm:$0xff] }
 0x153   :  { %v3817_v0 = vcombine.high %v1054_v57, %v1058_v58  ;;  %v851_v50 = vld [vmem:[%s5645_s3 + $0xb0] sm:$0xff] }
 0x155   :  { %2461 = vmatpush1.bf16.msra.mxu0 %v3758_v3  ;;  %2547 = vmatpush1.bf16.msra.mxu1 %v3760_v4  ;;  %v1062_v3 = vld [vmem:[%s5645_s3 + $0x748] sm:$0xff] }
 0x156   :  { %2462 = vmatprep.subr.bf16.mxu0 %v3767_v7  ;;  %2548 = vmatprep.subr.bf16.mxu1 %v3769_v8  ;;  %v1066_v4 = vld [vmem:[%s5645_s3 + $0x768] sm:$0xff]  ;;  %v3814_v7 = vcombine.low %v1053_v55, %v1057_v56  ;;  %v3816_v8 = vcombine.low %v1054_v57, %v1058_v58  ;;  %v3611_v56 = vcombine.high %v847_v49, %v851_v50  ;;  %v859_v57 = vld [vmem:[%s5645_s3 + $0xf0] sm:$0xff] }
 0x157   :  { %v3825_v10 = vcombine.high %v1062_v3, %v1066_v4 }
 0x159   :  { %2463 = vmatpush1.bf16.msra.mxu0 %v3766_v13  ;;  %2549 = vmatpush1.bf16.msra.mxu1 %v3768_v14  ;;  %v1070_v13 = vld [vmem:[%s5645_s3 + $0x788] sm:$0xff] }
 0x15a   :  { %2464 = vmatprep.subr.bf16.mxu0 %v3775_v15  ;;  %2550 = vmatprep.subr.bf16.mxu1 %v3777_v16  ;;  %v1074_v14 = vld [vmem:[%s5645_s3 + $0x7a8] sm:$0xff]  ;;  %v3822_v15 = vcombine.low %v1061_v1, %v1065_v2  ;;  %v3824_v16 = vcombine.low %v1062_v3, %v1066_v4  ;;  %v867_v2 = vld [vmem:[%s5645_s3 + $0x130] sm:$0xff]  ;;  %v864_v4 = vld [vmem:[%s5645_s3 + $0x118] sm:$0xff] }
 0x15b   :  { %v3833_v18 = vcombine.high %v1070_v13, %v1074_v14 }
 0x15d   :  { %2465 = vmatpush1.bf16.msra.mxu0 %v3774_v21  ;;  %2551 = vmatpush1.bf16.msra.mxu1 %v3776_v22  ;;  %v1078_v21 = vld [vmem:[%s5645_s3 + $0x7c8] sm:$0xff] }
 0x15e   :  { %2466 = vmatprep.subr.bf16.mxu0 %v3783_v23  ;;  %2552 = vmatprep.subr.bf16.mxu1 %v3785_v24  ;;  %v1082_v22 = vld [vmem:[%s5645_s3 + $0x7e8] sm:$0xff]  ;;  %v3830_v23 = vcombine.low %v1069_v11, %v1073_v12  ;;  %v3832_v24 = vcombine.low %v1070_v13, %v1074_v14  ;;  %v875_v12 = vld [vmem:[%s5645_s3 + $0x170] sm:$0xff]  ;;  %v872_v14 = vld [vmem:[%s5645_s3 + $0x158] sm:$0xff] }
 0x15f   :  { %v3841_v26 = vcombine.high %v1078_v21, %v1082_v22 }
 0x161   :  { %2467 = vmatpush1.bf16.msra.mxu0 %v3782_v29  ;;  %2553 = vmatpush1.bf16.msra.mxu1 %v3784_v30  ;;  %v832_v29 = vld [vmem:[%s5645_s3 + $0x18] sm:$0xff] }
 0x162   :  { %2468 = vmatprep.subr.bf16.mxu0 %v3791_v31  ;;  %2554 = vmatprep.subr.bf16.mxu1 %v3793_v32  ;;  %v836_v30 = vld [vmem:[%s5645_s3 + $0x38] sm:$0xff]  ;;  %v3838_v31 = vcombine.low %v1077_v19, %v1081_v20  ;;  %v3840_v32 = vcombine.low %v1078_v21, %v1082_v22  ;;  %v883_v20 = vld [vmem:[%s5645_s3 + $0x1b0] sm:$0xff] }
 0x163   :  { %v3597_v34 = vcombine.high %v832_v29, %v836_v30  ;;  %v880_v22 = vld [vmem:[%s5645_s3 + $0x198] sm:$0xff] }
 0x165   :  { %2469 = vmatpush1.bf16.msra.mxu0 %v3790_v37  ;;  %2555 = vmatpush1.bf16.msra.mxu1 %v3792_v38  ;;  %v840_v37 = vld [vmem:[%s5645_s3 + $0x58] sm:$0xff] }
 0x166   :  { %2470 = vmatprep.subr.bf16.mxu0 %v3799_v39  ;;  %2556 = vmatprep.subr.bf16.mxu1 %v3801_v40  ;;  %v844_v38 = vld [vmem:[%s5645_s3 + $0x78] sm:$0xff]  ;;  %v3594_v39 = vcombine.low %v831_v27, %v835_v28  ;;  %v3596_v40 = vcombine.low %v832_v29, %v836_v30  ;;  %v891_v28 = vld [vmem:[%s5645_s3 + $0x1f0] sm:$0xff] }
 0x167   :  { %v3605_v42 = vcombine.high %v840_v37, %v844_v38  ;;  %v3604_v55 = vcombine.low %v840_v37, %v844_v38  ;;  %v888_v30 = vld [vmem:[%s5645_s3 + $0x1d8] sm:$0xff] }
 0x168   :  { %v896_v38 = vld [vmem:[%s5645_s3 + $0x218] sm:$0xff] }
 0x169   :  { %2471 = vmatpush1.bf16.msra.mxu0 %v3798_v51  ;;  %2557 = vmatpush1.bf16.msra.mxu1 %v3800_v52  ;;  %v848_v51 = vld [vmem:[%s5645_s3 + $0x98] sm:$0xff] }
 0x16a   :  { %2472 = vmatprep.subr.bf16.mxu0 %v3807_v53  ;;  %2558 = vmatprep.subr.bf16.mxu1 %v3809_v54  ;;  %v852_v52 = vld [vmem:[%s5645_s3 + $0xb8] sm:$0xff]  ;;  %v3602_v53 = vcombine.low %v839_v35, %v843_v36  ;;  %v855_v54 = vld [vmem:[%s5645_s3 + $0xd0] sm:$0xff] }
 0x16b   :  { %v3613_v58 = vcombine.high %v848_v51, %v852_v52  ;;  %v3619_v1 = vcombine.high %v855_v54, %v859_v57  ;;  %v899_v36 = vld [vmem:[%s5645_s3 + $0x230] sm:$0xff] }
 0x16d   :  { %2473 = vmatpush1.bf16.msra.mxu0 %v3806_v60  ;;  %2559 = vmatpush1.bf16.msra.mxu1 %v3808_v61  ;;  %v856_v60 = vld [vmem:[%s5645_s3 + $0xd8] sm:$0xff] }
 0x16e   :  { %2474 = vmatprep.subr.bf16.mxu0 %v3815_v62  ;;  %2560 = vmatprep.subr.bf16.mxu1 %v3817_v0  ;;  %v860_v61 = vld [vmem:[%s5645_s3 + $0xf8] sm:$0xff]  ;;  %v3610_v62 = vcombine.low %v847_v49, %v851_v50  ;;  %v3612_v0 = vcombine.low %v848_v51, %v852_v52 }
 0x16f   :  { %v3621_v3 = vcombine.high %v856_v60, %v860_v61  ;;  %v904_v51 = vld [vmem:[%s5645_s3 + $0x258] sm:$0xff] }
 0x170   :  { %v908_v52 = vld [vmem:[%s5645_s3 + $0x278] sm:$0xff] }
 0x171   :  { %2475 = vmatpush1.bf16.msra.mxu0 %v3814_v7  ;;  %2561 = vmatpush1.bf16.msra.mxu1 %v3816_v8  ;;  %v868_v7 = vld [vmem:[%s5645_s3 + $0x138] sm:$0xff]  ;;  %v3618_v8 = vcombine.low %v855_v54, %v859_v57 }
 0x172   :  { %2476 = vmatprep.subr.bf16.mxu0 %v3823_v9  ;;  %2562 = vmatprep.subr.bf16.mxu1 %v3825_v10  ;;  %v871_v9 = vld [vmem:[%s5645_s3 + $0x150] sm:$0xff]  ;;  %v3620_v10 = vcombine.low %v856_v60, %v860_v61  ;;  %v3629_v13 = vcombine.high %v864_v4, %v868_v7  ;;  %v912_v60 = vld [vmem:[%s5645_s3 + $0x298] sm:$0xff] }
 0x173   :  { %v3635_v19 = vcombine.high %v871_v9, %v875_v12  ;;  %v916_v61 = vld [vmem:[%s5645_s3 + $0x2b8] sm:$0xff] }
 0x175   :  { %2477 = vmatpush1.bf16.msra.mxu0 %v3822_v15  ;;  %2563 = vmatpush1.bf16.msra.mxu1 %v3824_v16  ;;  %v876_v15 = vld [vmem:[%s5645_s3 + $0x178] sm:$0xff] }
 0x176   :  { %2478 = vmatprep.subr.bf16.mxu0 %v3831_v17  ;;  %2564 = vmatprep.subr.bf16.mxu1 %v3833_v18  ;;  %v879_v17 = vld [vmem:[%s5645_s3 + $0x190] sm:$0xff]  ;;  %v3628_v18 = vcombine.low %v864_v4, %v868_v7  ;;  %v3637_v21 = vcombine.high %v872_v14, %v876_v15  ;;  %v920_v4 = vld [vmem:[%s5645_s3 + $0x2d8] sm:$0xff] }
 0x177   :  { %v3643_v27 = vcombine.high %v879_v17, %v883_v20  ;;  %v924_v7 = vld [vmem:[%s5645_s3 + $0x2f8] sm:$0xff] }
 0x179   :  { %2479 = vmatpush1.bf16.msra.mxu0 %v3830_v23  ;;  %2565 = vmatpush1.bf16.msra.mxu1 %v3832_v24  ;;  %v884_v23 = vld [vmem:[%s5645_s3 + $0x1b8] sm:$0xff]  ;;  %v3634_v24 = vcombine.low %v871_v9, %v875_v12  ;;  %v3676_v12 = vcombine.low %v912_v60, %v916_v61 }
 0x17a   :  { %2480 = vmatprep.subr.bf16.mxu0 %v3839_v25  ;;  %2566 = vmatprep.subr.bf16.mxu1 %v3841_v26  ;;  %v887_v25 = vld [vmem:[%s5645_s3 + $0x1d0] sm:$0xff]  ;;  %v3636_v26 = vcombine.low %v872_v14, %v876_v15  ;;  %v3645_v29 = vcombine.high %v880_v22, %v884_v23  ;;  %v928_v14 = vld [vmem:[%s5645_s3 + $0x318] sm:$0xff] }
 0x17b   :  { %v3651_v35 = vcombine.high %v887_v25, %v891_v28  ;;  %v932_v15 = vld [vmem:[%s5645_s3 + $0x338] sm:$0xff] }
 0x17d   :  { %2481 = vmatpush1.bf16.msra.mxu0 %v3838_v31  ;;  %2567 = vmatpush1.bf16.msra.mxu1 %v3840_v32  ;;  %v892_v31 = vld [vmem:[%s5645_s3 + $0x1f8] sm:$0xff]  ;;  %v3642_v32 = vcombine.low %v879_v17, %v883_v20  ;;  %v3684_v20 = vcombine.low %v920_v4, %v924_v7 }
 0x17e   :  { %2579 = vmatprep.subr.bf16.mxu0 %v3595_v33  ;;  %2665 = vmatprep.subr.bf16.mxu1 %v3597_v34  ;;  %v895_v33 = vld [vmem:[%s5645_s3 + $0x210] sm:$0xff]  ;;  %v3644_v34 = vcombine.low %v880_v22, %v884_v23  ;;  %v3653_v37 = vcombine.high %v888_v30, %v892_v31  ;;  %v3652_v49 = vcombine.low %v888_v30, %v892_v31  ;;  %v936_v22 = vld [vmem:[%s5645_s3 + $0x358] sm:$0xff] }
 0x17f   :  { %v3659_v50 = vcombine.high %v895_v33, %v899_v36  ;;  %v3658_v54 = vcombine.low %v895_v33, %v899_v36  ;;  %v940_v23 = vld [vmem:[%s5645_s3 + $0x378] sm:$0xff] }
 0x180   :  { %2483 = vmatmul.mubr.bf16.vlgmr.msra.gmra.mrb[4].mxu0 %v4884_v43  ;;  %2569 = vmatmul.mubr.bf16.vlgmr.msra.gmra.mrb[4].mxu1 %v4884_v43  ;;  %v944_v30 = vld [vmem:[%s5645_s3 + $0x398] sm:$0xff]  ;;  %v3700_v36 = vcombine.low %v936_v22, %v940_v23 }
 0x181   :  { %2580 = vmatpush1.bf16.msra.mxu0 %v3594_v39  ;;  %2611 = vmatprep.mubr.bf16.mxu0 %v4838_v6  ;;  %v900_v39 = vld [vmem:[%s5645_s3 + $0x238] sm:$0xff] }
 0x182   :  { %2666 = vmatpush1.bf16.msra.mxu1 %v3596_v40  ;;  %2697 = vmatprep.mubr.bf16.mxu1 %v4838_v6  ;;  %v863_v6 = vld [vmem:[%s5645_s3 + $0x110] sm:$0xff]  ;;  %v3650_v40 = vcombine.low %v887_v25, %v891_v28  ;;  %v3660_v57 = vcombine.low %v896_v38, %v900_v39  ;;  %v3692_v28 = vcombine.low %v928_v14, %v932_v15  ;;  %v948_v31 = vld [vmem:[%s5645_s3 + $0x3b8] sm:$0xff] }
 0x183   :  { %2581 = vmatprep.subr.bf16.mxu0 %v3603_v41  ;;  %2667 = vmatprep.subr.bf16.mxu1 %v3605_v42  ;;  %v3627_v11 = vcombine.high %v863_v6, %v867_v2  ;;  %v3626_v16 = vcombine.low %v863_v6, %v867_v2  ;;  %v903_v41 = vld [vmem:[%s5645_s3 + $0x250] sm:$0xff]  ;;  %v3668_v2 = vcombine.low %v904_v51, %v908_v52 }
 0x184   :  { %v907_v42 = vld [vmem:[%s5645_s3 + $0x270] sm:$0xff] }
 0x185   :  { %2582 = vmatpush1.bf16.msra.mxu0 %v3602_v53  ;;  %v3661_v53 = vcombine.high %v896_v38, %v900_v39  ;;  %v3666_v6 = vcombine.low %v903_v41, %v907_v42  ;;  %v3709_v38 = vcombine.high %v944_v30, %v948_v31  ;;  %v952_v39 = vld [vmem:[%s5645_s3 + $0x3d8] sm:$0xff] }
 0x186   :  { %2668 = vmatpush1.bf16.msra.mxu1 %v3604_v55  ;;  %2583 = vmatprep.subr.bf16.mxu0 %v3611_v56  ;;  %v911_v55 = vld [vmem:[%s5645_s3 + $0x290] sm:$0xff] }
 0x187   :  { %2669 = vmatprep.subr.bf16.mxu1 %v3613_v58  ;;  %v915_v56 = vld [vmem:[%s5645_s3 + $0x2b0] sm:$0xff]  ;;  %v3667_v58 = vcombine.high %v903_v41, %v907_v42  ;;  %v3708_v42 = vcombine.low %v944_v30, %v948_v31  ;;  %v1000_v30 = vld [vmem:[%s5645_s3 + $0x558] sm:$0xff] }
 0x188   :  { %v3674_v9 = vcombine.low %v911_v55, %v915_v56  ;;  %v1004_v31 = vld [vmem:[%s5645_s3 + $0x578] sm:$0xff] }
 0x189   :  { %2584 = vmatpush1.bf16.msra.mxu0 %v3610_v62  ;;  %v3669_v62 = vcombine.high %v904_v51, %v908_v52  ;;  %v959_v51 = vld [vmem:[%s5645_s3 + $0x410] sm:$0xff] }
 0x18a   :  { %2670 = vmatpush1.bf16.msra.mxu1 %v3612_v0  ;;  %2585 = vmatprep.subr.bf16.mxu0 %v3619_v1  ;;  %v919_v0 = vld [vmem:[%s5645_s3 + $0x2d0] sm:$0xff] }
 0x18b   :  { %2671 = vmatprep.subr.bf16.mxu1 %v3621_v3  ;;  %v923_v1 = vld [vmem:[%s5645_s3 + $0x2f0] sm:$0xff]  ;;  %v3675_v3 = vcombine.high %v911_v55, %v915_v56 }
 0x18c   :  { %v3682_v17 = vcombine.low %v919_v0, %v923_v1  ;;  %v963_v52 = vld [vmem:[%s5645_s3 + $0x430] sm:$0xff] }
 0x18d   :  { %2586 = vmatpush1.bf16.msra.mxu0 %v3618_v8  ;;  %v3677_v8 = vcombine.high %v912_v60, %v916_v61  ;;  %v967_v60 = vld [vmem:[%s5645_s3 + $0x450] sm:$0xff] }
 0x18e   :  { %2672 = vmatpush1.bf16.msra.mxu1 %v3620_v10  ;;  %2587 = vmatprep.subr.bf16.mxu0 %v3627_v11  ;;  %v927_v10 = vld [vmem:[%s5645_s3 + $0x310] sm:$0xff] }
 0x18f   :  { %2673 = vmatprep.subr.bf16.mxu1 %v3629_v13  ;;  %v931_v11 = vld [vmem:[%s5645_s3 + $0x330] sm:$0xff]  ;;  %v3683_v13 = vcombine.high %v919_v0, %v923_v1  ;;  %v972_v0 = vld [vmem:[%s5645_s3 + $0x478] sm:$0xff] }
 0x190   :  { %v3690_v25 = vcombine.low %v927_v10, %v931_v11  ;;  %v971_v61 = vld [vmem:[%s5645_s3 + $0x470] sm:$0xff] }
 0x191   :  { %2588 = vmatpush1.bf16.msra.mxu0 %v3626_v16  ;;  %v3685_v16 = vcombine.high %v920_v4, %v924_v7  ;;  %v979_v4 = vld [vmem:[%s5645_s3 + $0x4b0] sm:$0xff] }
 0x192   :  { %2674 = vmatpush1.bf16.msra.mxu1 %v3628_v18  ;;  %2589 = vmatprep.subr.bf16.mxu0 %v3635_v19  ;;  %v935_v18 = vld [vmem:[%s5645_s3 + $0x350] sm:$0xff] }
 0x193   :  { %2675 = vmatprep.subr.bf16.mxu1 %v3637_v21  ;;  %v939_v19 = vld [vmem:[%s5645_s3 + $0x370] sm:$0xff]  ;;  %v3691_v21 = vcombine.high %v927_v10, %v931_v11  ;;  %v3730_v10 = vcombine.low %v967_v60, %v971_v61 }
 0x194   :  { %v3698_v33 = vcombine.low %v935_v18, %v939_v19 }
 0x195   :  { %2590 = vmatpush1.bf16.msra.mxu0 %v3634_v24  ;;  %v3693_v24 = vcombine.high %v928_v14, %v932_v15  ;;  %v983_v14 = vld [vmem:[%s5645_s3 + $0x4d0] sm:$0xff] }
 0x196   :  { %2676 = vmatpush1.bf16.msra.mxu1 %v3636_v26  ;;  %2591 = vmatprep.subr.bf16.mxu0 %v3643_v27  ;;  %v943_v26 = vld [vmem:[%s5645_s3 + $0x390] sm:$0xff] }
 0x197   :  { %2677 = vmatprep.subr.bf16.mxu1 %v3645_v29  ;;  %v947_v27 = vld [vmem:[%s5645_s3 + $0x3b0] sm:$0xff]  ;;  %v3699_v29 = vcombine.high %v935_v18, %v939_v19 }
 0x198   :  { %v3706_v41 = vcombine.low %v943_v26, %v947_v27  ;;  %v987_v15 = vld [vmem:[%s5645_s3 + $0x4f0] sm:$0xff] }
 0x199   :  { %2592 = vmatpush1.bf16.msra.mxu0 %v3642_v32  ;;  %v3701_v32 = vcombine.high %v936_v22, %v940_v23  ;;  %v3747_v18 = vcombine.high %v983_v14, %v987_v15  ;;  %v992_v22 = vld [vmem:[%s5645_s3 + $0x518] sm:$0xff] }
 0x19a   :  { %2678 = vmatpush1.bf16.msra.mxu1 %v3644_v34  ;;  %2593 = vmatprep.subr.bf16.mxu0 %v3651_v35  ;;  %v951_v34 = vld [vmem:[%s5645_s3 + $0x3d0] sm:$0xff]  ;;  %v996_v23 = vld [vmem:[%s5645_s3 + $0x538] sm:$0xff] }
 0x19b   :  { %2679 = vmatprep.subr.bf16.mxu1 %v3653_v37  ;;  %v955_v35 = vld [vmem:[%s5645_s3 + $0x3f0] sm:$0xff]  ;;  %v3707_v37 = vcombine.high %v943_v26, %v947_v27  ;;  %v3757_v27 = vcombine.high %v992_v22, %v996_v23 }
 0x19c   :  { %v3714_v55 = vcombine.low %v951_v34, %v955_v35 }
 0x19d   :  { %2594 = vmatpush1.bf16.msra.mxu0 %v3650_v40  ;;  %v956_v40 = vld [vmem:[%s5645_s3 + $0x3f8] sm:$0xff] }
 0x19e   :  { %2680 = vmatpush1.bf16.msra.mxu1 %v3652_v49  ;;  %2595 = vmatprep.subr.bf16.mxu0 %v3659_v50  ;;  %v3715_v49 = vcombine.high %v951_v34, %v955_v35  ;;  %v3717_v50 = vcombine.high %v952_v39, %v956_v40  ;;  %v3716_v56 = vcombine.low %v952_v39, %v956_v40  ;;  %v1012_v39 = vld [vmem:[%s5645_s3 + $0x5b8] sm:$0xff] }
 0x19f   :  { %2681 = vmatprep.subr.bf16.mxu1 %v3661_v53  ;;  %v960_v53 = vld [vmem:[%s5645_s3 + $0x418] sm:$0xff]  ;;  %v3765_v35 = vcombine.high %v1000_v30, %v1004_v31 }
 0x1a1   :  { %2596 = vmatpush1.bf16.msra.mxu0 %v3658_v54  ;;  %v964_v54 = vld [vmem:[%s5645_s3 + $0x438] sm:$0xff] }
 0x1a2   :  { %2682 = vmatpush1.bf16.msra.mxu1 %v3660_v57  ;;  %2597 = vmatprep.subr.bf16.mxu0 %v3667_v58  ;;  %v3723_v57 = vcombine.high %v959_v51, %v963_v52  ;;  %v3725_v58 = vcombine.high %v960_v53, %v964_v54  ;;  %v3724_v1 = vcombine.low %v960_v53, %v964_v54  ;;  %v1020_v53 = vld [vmem:[%s5645_s3 + $0x5f8] sm:$0xff] }
 0x1a3   :  { %2683 = vmatprep.subr.bf16.mxu1 %v3669_v62  ;;  %v3722_v62 = vcombine.low %v959_v51, %v963_v52  ;;  %v1019_v51 = vld [vmem:[%s5645_s3 + $0x5f0] sm:$0xff]  ;;  %v1016_v52 = vld [vmem:[%s5645_s3 + $0x5d8] sm:$0xff] }
 0x1a5   :  { %2598 = vmatpush1.bf16.msra.mxu0 %v3666_v6  ;;  %v968_v6 = vld [vmem:[%s5645_s3 + $0x458] sm:$0xff] }
 0x1a6   :  { %2684 = vmatpush1.bf16.msra.mxu1 %v3668_v2  ;;  %2599 = vmatprep.subr.bf16.mxu0 %v3675_v3  ;;  %v3731_v2 = vcombine.high %v967_v60, %v971_v61  ;;  %v975_v3 = vld [vmem:[%s5645_s3 + $0x490] sm:$0xff]  ;;  %v3733_v7 = vcombine.high %v968_v6, %v972_v0  ;;  %v3732_v11 = vcombine.low %v968_v6, %v972_v0  ;;  %v1024_v61 = vld [vmem:[%s5645_s3 + $0x618] sm:$0xff] }
 0x1a7   :  { %2685 = vmatprep.subr.bf16.mxu1 %v3677_v8  ;;  %v976_v8 = vld [vmem:[%s5645_s3 + $0x498] sm:$0xff]  ;;  %v1027_v60 = vld [vmem:[%s5645_s3 + $0x630] sm:$0xff]  ;;  %v3780_v0 = vcombine.low %v1016_v52, %v1020_v53 }
 0x1a9   :  { %2600 = vmatpush1.bf16.msra.mxu0 %v3674_v9  ;;  %v980_v9 = vld [vmem:[%s5645_s3 + $0x4b8] sm:$0xff] }
 0x1aa   :  { %2686 = vmatpush1.bf16.msra.mxu1 %v3676_v12  ;;  %2601 = vmatprep.subr.bf16.mxu0 %v3683_v13  ;;  %v3739_v12 = vcombine.high %v975_v3, %v979_v4  ;;  %v3741_v13 = vcombine.high %v976_v8, %v980_v9 }
 0x1ab   :  { %2687 = vmatprep.subr.bf16.mxu1 %v3685_v16  ;;  %v988_v16 = vld [vmem:[%s5645_s3 + $0x4f8] sm:$0xff] }
 0x1ad   :  { %2602 = vmatpush1.bf16.msra.mxu0 %v3682_v17  ;;  %v3740_v17 = vcombine.low %v976_v8, %v980_v9  ;;  %v1036_v8 = vld [vmem:[%s5645_s3 + $0x678] sm:$0xff] }
 0x1ae   :  { %2688 = vmatpush1.bf16.msra.mxu1 %v3684_v20  ;;  %2603 = vmatprep.subr.bf16.mxu0 %v3691_v21  ;;  %v991_v20 = vld [vmem:[%s5645_s3 + $0x510] sm:$0xff] }
 0x1af   :  { %2689 = vmatprep.subr.bf16.mxu1 %v3693_v24  ;;  %v995_v21 = vld [vmem:[%s5645_s3 + $0x530] sm:$0xff]  ;;  %v3746_v24 = vcombine.low %v983_v14, %v987_v15  ;;  %v1040_v15 = vld [vmem:[%s5645_s3 + $0x698] sm:$0xff] }
 0x1b0   :  { %v3755_v26 = vcombine.high %v991_v20, %v995_v21  ;;  %v1043_v14 = vld [vmem:[%s5645_s3 + $0x6b0] sm:$0xff] }
 0x1b1   :  { %2604 = vmatpush1.bf16.msra.mxu0 %v3690_v25 }
 0x1b2   :  { %2690 = vmatpush1.bf16.msra.mxu1 %v3692_v28  ;;  %2605 = vmatprep.subr.bf16.mxu0 %v3699_v29  ;;  %v999_v28 = vld [vmem:[%s5645_s3 + $0x550] sm:$0xff] }
 0x1b3   :  { %2691 = vmatprep.subr.bf16.mxu1 %v3701_v32  ;;  %v1003_v29 = vld [vmem:[%s5645_s3 + $0x570] sm:$0xff]  ;;  %v3754_v32 = vcombine.low %v991_v20, %v995_v21  ;;  %v1048_v21 = vld [vmem:[%s5645_s3 + $0x6d8] sm:$0xff] }
 0x1b4   :  { %v3763_v34 = vcombine.high %v999_v28, %v1003_v29  ;;  %v3762_v40 = vcombine.low %v999_v28, %v1003_v29  ;;  %v1051_v20 = vld [vmem:[%s5645_s3 + $0x6f0] sm:$0xff]  ;;  %v1056_v29 = vld [vmem:[%s5645_s3 + $0x718] sm:$0xff] }
 0x1b5   :  { %2606 = vmatpush1.bf16.msra.mxu0 %v3698_v33  ;;  %v3756_v33 = vcombine.low %v992_v22, %v996_v23  ;;  %v1052_v22 = vld [vmem:[%s5645_s3 + $0x6f8] sm:$0xff]  ;;  %v1059_v28 = vld [vmem:[%s5645_s3 + $0x730] sm:$0xff] }
 0x1b6   :  { %2692 = vmatpush1.bf16.msra.mxu1 %v3700_v36  ;;  %2607 = vmatprep.subr.bf16.mxu0 %v3707_v37  ;;  %v1007_v36 = vld [vmem:[%s5645_s3 + $0x590] sm:$0xff] }
 0x1b7   :  { %2693 = vmatprep.subr.bf16.mxu1 %v3709_v38  ;;  %v1011_v37 = vld [vmem:[%s5645_s3 + $0x5b0] sm:$0xff]  ;;  %v1008_v38 = vld [vmem:[%s5645_s3 + $0x598] sm:$0xff] }
 0x1b8   :  { %v3770_v54 = vcombine.low %v1007_v36, %v1011_v37 }
 0x1b9   :  { %2608 = vmatpush1.bf16.msra.mxu0 %v3706_v41  ;;  %v3764_v41 = vcombine.low %v1000_v30, %v1004_v31  ;;  %v1060_v30 = vld [vmem:[%s5645_s3 + $0x738] sm:$0xff] }
 0x1ba   :  { %2694 = vmatpush1.bf16.msra.mxu1 %v3708_v42  ;;  %2609 = vmatprep.subr.bf16.mxu0 %v3715_v49  ;;  %v3771_v42 = vcombine.high %v1007_v36, %v1011_v37  ;;  %v3773_v49 = vcombine.high %v1008_v38, %v1012_v39  ;;  %v1067_v36 = vld [vmem:[%s5645_s3 + $0x770] sm:$0xff]  ;;  %v1064_v37 = vld [vmem:[%s5645_s3 + $0x758] sm:$0xff] }
 0x1bb   :  { %2695 = vmatprep.subr.bf16.mxu1 %v3717_v50  ;;  %v1015_v50 = vld [vmem:[%s5645_s3 + $0x5d0] sm:$0xff] }
 0x1bc   :  { %v3778_v6 = vcombine.low %v1015_v50, %v1019_v51 }
 0x1bd   :  { %2610 = vmatpush1.bf16.msra.mxu0 %v3714_v55  ;;  %v3772_v55 = vcombine.low %v1008_v38, %v1012_v39  ;;  %v1068_v38 = vld [vmem:[%s5645_s3 + $0x778] sm:$0xff] }
 0x1be   :  { %2696 = vmatpush1.bf16.msra.mxu1 %v3716_v56  ;;  %2622 = vmatprep.subr.bf16.mxu0 %v3723_v57  ;;  %v3779_v56 = vcombine.high %v1015_v50, %v1019_v51  ;;  %v3781_v57 = vcombine.high %v1016_v52, %v1020_v53  ;;  %v1075_v50 = vld [vmem:[%s5645_s3 + $0x7b0] sm:$0xff]  ;;  %v1072_v51 = vld [vmem:[%s5645_s3 + $0x798] sm:$0xff] }
 0x1bf   :  { %2708 = vmatprep.subr.bf16.mxu1 %v3725_v58  ;;  %v1023_v58 = vld [vmem:[%s5645_s3 + $0x610] sm:$0xff]  ;;  %v1076_v52 = vld [vmem:[%s5645_s3 + $0x7b8] sm:$0xff] }
 0x1c0   :  { %2612 = vmatmul.mubr.bf16.vlgmr.msra.gmra.mrb[8].mxu0 %v4836_v5  ;;  %v3786_v9 = vcombine.low %v1023_v58, %v1027_v60 }
 0x1c1   :  { %2698 = vmatmul.mubr.bf16.vlgmr.msra.gmra.mrb[8].mxu1 %v4836_v5  ;;  %2623 = vmatpush1.bf16.msra.mxu0 %v3722_v62  ;;  %v984_v5 = vld [vmem:[%s5645_s3 + $0x4d8] sm:$0xff] }
 0x1c2   :  { %2654 = vmatprep.mubr.bf16.mxu0 %v4886_v47  ;;  %2709 = vmatpush1.bf16.msra.mxu1 %v3724_v1  ;;  %v3749_v19 = vcombine.high %v984_v5, %v988_v16  ;;  %v3748_v25 = vcombine.low %v984_v5, %v988_v16  ;;  %v1028_v62 = vld [vmem:[%s5645_s3 + $0x638] sm:$0xff]  ;;  %v3787_v1 = vcombine.high %v1023_v58, %v1027_v60  ;;  %v1083_v58 = vld [vmem:[%s5645_s3 + $0x7f0] sm:$0xff] }
 0x1c3   :  { %2740 = vmatprep.mubr.bf16.mxu1 %v4886_v47  ;;  %2624 = vmatprep.subr.bf16.mxu0 %v3731_v2  ;;  %v3738_v47 = vcombine.low %v975_v3, %v979_v4  ;;  %v3789_v2 = vcombine.high %v1024_v61, %v1028_v62  ;;  %v1031_v3 = vld [vmem:[%s5645_s3 + $0x650] sm:$0xff]  ;;  %v1044_v5 = vld [vmem:[%s5645_s3 + $0x6b8] sm:$0xff] }
 0x1c4   :  { %2710 = vmatprep.subr.bf16.mxu1 %v3733_v7  ;;  %v1035_v4 = vld [vmem:[%s5645_s3 + $0x670] sm:$0xff]  ;;  %v1032_v7 = vld [vmem:[%s5645_s3 + $0x658] sm:$0xff] }
 0x1c5   :  { %2625 = vmatpush1.bf16.msra.mxu0 %v3730_v10  ;;  %v3788_v10 = vcombine.low %v1024_v61, %v1028_v62  ;;  %v3794_v16 = vcombine.low %v1031_v3, %v1035_v4  ;;  %v1080_v60 = vld [vmem:[%s5645_s3 + $0x7d8] sm:$0xff] }
 0x1c6   :  { %2711 = vmatpush1.bf16.msra.mxu1 %v3732_v11  ;;  %2626 = vmatprep.subr.bf16.mxu0 %v3739_v12  ;;  %v3795_v11 = vcombine.high %v1031_v3, %v1035_v4  ;;  %v3797_v12 = vcombine.high %v1032_v7, %v1036_v8  ;;  %v1084_v61 = vld [vmem:[%s5645_s3 + $0x7f8] sm:$0xff]  ;;  %v4196_v4 = vld [vmem:[%s5647_s5 + $0x40] sm:$0xff]  }
 0x1c7   :  { %2712 = vmatprep.subr.bf16.mxu1 %v3741_v13  ;;  %v1039_v13 = vld [vmem:[%s5645_s3 + $0x690] sm:$0xff]  ;;  %v3844_v3 = vcombine.low %v1080_v60, %v1084_v61 }
 0x1c8   :  { %v3802_v23 = vcombine.low %v1039_v13, %v1043_v14 }
 0x1c9   :  { %2627 = vmatpush1.bf16.msra.mxu0 %v3738_v47  ;;  %v3796_v47 = vcombine.low %v1032_v7, %v1036_v8  ;;  %v4197_v7 = vld [vmem:[%s5647_s5 + $0xc0] sm:$0xff]  }
 0x1ca   :  { %2713 = vmatpush1.bf16.msra.mxu1 %v3740_v17  ;;  %2628 = vmatprep.subr.bf16.mxu0 %v3747_v18  ;;  %v3803_v17 = vcombine.high %v1039_v13, %v1043_v14  ;;  %v3805_v18 = vcombine.high %v1040_v15, %v1044_v5  ;;  %v4198_v8 = vld [vmem:[%s5647_s5] sm:$0xff]   ;;  %v4203_v13 = vld [vmem:[%s5647_s5 + $0x88] sm:$0xff]   ;;  %v4204_v14 = vld [vmem:[%s5647_s5 + $0x50] sm:$0xff]  }
 0x1cb   :  { %2714 = vmatprep.subr.bf16.mxu1 %v3749_v19  ;;  %v1047_v19 = vld [vmem:[%s5645_s3 + $0x6d0] sm:$0xff] }
 0x1cc   :  { %v3810_v31 = vcombine.low %v1047_v19, %v1051_v20 }
 0x1cd   :  { %2629 = vmatpush1.bf16.msra.mxu0 %v3746_v24  ;;  %v3804_v24 = vcombine.low %v1040_v15, %v1044_v5  ;;  %v4206_v15 = vld [vmem:[%s5647_s5 + $0x10] sm:$0xff]  }
 0x1ce   :  { %2715 = vmatpush1.bf16.msra.mxu1 %v3748_v25  ;;  %2630 = vmatprep.subr.bf16.mxu0 %v3755_v26  ;;  %v3811_v25 = vcombine.high %v1047_v19, %v1051_v20  ;;  %v3813_v26 = vcombine.high %v1048_v21, %v1052_v22  ;;  %v4207_v5 = vld [vmem:[%s5647_s5 + $0x90] sm:$0xff]   ;;  %v4212_v19 = vld [vmem:[%s5647_s5 + $0x60] sm:$0xff]  }
 0x1cf   :  { %2716 = vmatprep.subr.bf16.mxu1 %v3757_v27  ;;  %v1055_v27 = vld [vmem:[%s5645_s3 + $0x710] sm:$0xff]  ;;  %v4213_v20 = vld [vmem:[%s5647_s5 + $0xe0] sm:$0xff]  }
 0x1d0   :  { %v3818_v39 = vcombine.low %v1055_v27, %v1059_v28 }
 0x1d1   :  { %2631 = vmatpush1.bf16.msra.mxu0 %v3754_v32  ;;  %v3812_v32 = vcombine.low %v1048_v21, %v1052_v22  ;;  %v4214_v21 = vld [vmem:[%s5647_s5 + $0x20] sm:$0xff]  }
 0x1d2   :  { %2717 = vmatpush1.bf16.msra.mxu1 %v3756_v33  ;;  %2632 = vmatprep.subr.bf16.mxu0 %v3763_v34  ;;  %v3819_v33 = vcombine.high %v1055_v27, %v1059_v28  ;;  %v3821_v34 = vcombine.high %v1056_v29, %v1060_v30  ;;  %v4215_v22 = vld [vmem:[%s5647_s5 + $0xa0] sm:$0xff]   ;;  %v4220_v27 = vld [vmem:[%s5647_s5 + $0x70] sm:$0xff]  }
 0x1d3   :  { %2718 = vmatprep.subr.bf16.mxu1 %v3765_v35  ;;  %v1063_v35 = vld [vmem:[%s5645_s3 + $0x750] sm:$0xff] }
 0x1d4   :  { %v3826_v53 = vcombine.low %v1063_v35, %v1067_v36  ;;  %v4221_v28 = vld [vmem:[%s5647_s5 + $0xf0] sm:$0xff]  }
 0x1d5   :  { %2633 = vmatpush1.bf16.msra.mxu0 %v3762_v40  ;;  %v3820_v40 = vcombine.low %v1056_v29, %v1060_v30  ;;  %v4222_v29 = vld [vmem:[%s5647_s5 + $0x30] sm:$0xff]  }
 0x1d6   :  { %2719 = vmatpush1.bf16.msra.mxu1 %v3764_v41  ;;  %2634 = vmatprep.subr.bf16.mxu0 %v3771_v42  ;;  %v3827_v41 = vcombine.high %v1063_v35, %v1067_v36  ;;  %v3829_v42 = vcombine.high %v1064_v37, %v1068_v38  ;;  %v4223_v30 = vld [vmem:[%s5647_s5 + $0xb0] sm:$0xff]   ;;  %v4228_v35 = vld [vmem:[%s5647_s5 + $0x140] sm:$0xff]  }
 0x1d7   :  { %2720 = vmatprep.subr.bf16.mxu1 %v3773_v49  ;;  %v1071_v49 = vld [vmem:[%s5645_s3 + $0x790] sm:$0xff]  ;;  %v4229_v36 = vld [vmem:[%s5647_s5 + $0x1c0] sm:$0xff]  }
 0x1d8   :  { %v3834_v62 = vcombine.low %v1071_v49, %v1075_v50 }
 0x1d9   :  { %2635 = vmatpush1.bf16.msra.mxu0 %v3770_v54  ;;  %v3828_v54 = vcombine.low %v1064_v37, %v1068_v38  ;;  %v5521_v37 = vld [vmem:[%s5648_s4] sm:$0xff] }
 0x1da   :  { %2721 = vmatpush1.bf16.msra.mxu1 %v3772_v55  ;;  %2636 = vmatprep.subr.bf16.mxu0 %v3779_v56  ;;  %v3835_v55 = vcombine.high %v1071_v49, %v1075_v50  ;;  %v3837_v56 = vcombine.high %v1072_v51, %v1076_v52  ;;  %v1090_v38 = vrot.slane %v5521_v37, %v131_v46 }
 0x1db   :  { %2722 = vmatprep.subr.bf16.mxu1 %v3781_v57  ;;  %v1079_v57 = vld [vmem:[%s5645_s3 + $0x7d0] sm:$0xff] }
 0x1dd   :  { %2637 = vmatpush1.bf16.msra.mxu0 %v3778_v6  ;;  %v3836_v6 = vcombine.low %v1072_v51, %v1076_v52 }
 0x1de   :  { %2723 = vmatpush1.bf16.msra.mxu1 %v3780_v0  ;;  %2638 = vmatprep.subr.bf16.mxu0 %v3787_v1  ;;  %v3843_v0 = vcombine.high %v1079_v57, %v1083_v58  ;;  %v3845_v1 = vcombine.high %v1080_v60, %v1084_v61 }
 0x1df   :  { %2724 = vmatprep.subr.bf16.mxu1 %v3789_v2  ;;  %v3842_v2 = vcombine.low %v1079_v57, %v1083_v58 }
 0x1e1   :  { %2639 = vmatpush1.bf16.msra.mxu0 %v3786_v9  ;;  %v4199_v9 = vld [vmem:[%s5647_s5 + $0x80] sm:$0xff]  }
 0x1e2   :  { %2725 = vmatpush1.bf16.msra.mxu1 %v3788_v10  ;;  %2640 = vmatprep.subr.bf16.mxu0 %v3795_v11  ;;  %v4200_v10 = vld [vmem:[%s5647_s5 + $0x48] sm:$0xff]  }
 0x1e3   :  { %2726 = vmatprep.subr.bf16.mxu1 %v3797_v12  ;;  %v4201_v11 = vld [vmem:[%s5647_s5 + $0xc8] sm:$0xff]  }
 0x1e4   :  { %v4202_v12 = vld [vmem:[%s5647_s5 + $0x8] sm:$0xff]  }
 0x1e5   :  { %2641 = vmatpush1.bf16.msra.mxu0 %v3794_v16  ;;  %v4208_v16 = vld [vmem:[%s5647_s5 + $0x58] sm:$0xff]  }
 0x1e6   :  { %2727 = vmatpush1.bf16.msra.mxu1 %v3796_v47  ;;  %2642 = vmatprep.subr.bf16.mxu0 %v3803_v17  ;;  %v4209_v47 = vld [vmem:[%s5647_s5 + $0xd8] sm:$0xff]  }
 0x1e7   :  { %2728 = vmatprep.subr.bf16.mxu1 %v3805_v18  ;;  %v4210_v17 = vld [vmem:[%s5647_s5 + $0x18] sm:$0xff]  }
 0x1e8   :  { %v4211_v18 = vld [vmem:[%s5647_s5 + $0x98] sm:$0xff]  }
 0x1e9   :  { %2643 = vmatpush1.bf16.msra.mxu0 %v3802_v23  ;;  %v4216_v23 = vld [vmem:[%s5647_s5 + $0x68] sm:$0xff]  }
 0x1ea   :  { %2729 = vmatpush1.bf16.msra.mxu1 %v3804_v24  ;;  %2644 = vmatprep.subr.bf16.mxu0 %v3811_v25  ;;  %v4217_v24 = vld [vmem:[%s5647_s5 + $0xe8] sm:$0xff]  }
 0x1eb   :  { %2730 = vmatprep.subr.bf16.mxu1 %v3813_v26  ;;  %v4218_v25 = vld [vmem:[%s5647_s5 + $0x28] sm:$0xff]  }
 0x1ec   :  { %v4219_v26 = vld [vmem:[%s5647_s5 + $0xa8] sm:$0xff]  }
 0x1ed   :  { %2645 = vmatpush1.bf16.msra.mxu0 %v3810_v31  ;;  %v4224_v31 = vld [vmem:[%s5647_s5 + $0x78] sm:$0xff]  }
 0x1ee   :  { %2731 = vmatpush1.bf16.msra.mxu1 %v3812_v32  ;;  %2646 = vmatprep.subr.bf16.mxu0 %v3819_v33  ;;  %v4225_v32 = vld [vmem:[%s5647_s5 + $0xf8] sm:$0xff]  }
 0x1ef   :  { %2732 = vmatprep.subr.bf16.mxu1 %v3821_v34  ;;  %v4226_v33 = vld [vmem:[%s5647_s5 + $0x38] sm:$0xff]  }
 0x1f0   :  { %v4227_v34 = vld [vmem:[%s5647_s5 + $0xb8] sm:$0xff]  }
 0x1f1   :  { %2647 = vmatpush1.bf16.msra.mxu0 %v3818_v39  ;;  %v1098_v39 = vrot.slane %v5521_v37, %v139_v59 }
 0x1f2   :  { %2733 = vmatpush1.bf16.msra.mxu1 %v3820_v40  ;;  %2648 = vmatprep.subr.bf16.mxu0 %v3827_v41  ;;  %v1094_v40 = vrot.slane %v5521_v37, %v135_v48  ;;  %v1102_v41 = vrot.slane %v5521_v37, %v143_v63 }
 0x1f3   :  { %2734 = vmatprep.subr.bf16.mxu1 %v3829_v42 }
 0x1f5   :  { %2649 = vmatpush1.bf16.msra.mxu0 %v3826_v53 }
 0x1f6   :  { %2735 = vmatpush1.bf16.msra.mxu1 %v3828_v54  ;;  %2650 = vmatprep.subr.bf16.mxu0 %v3835_v55 }
 0x1f7   :  { %2736 = vmatprep.subr.bf16.mxu1 %v3837_v56 }
 0x1f9   :  { %2651 = vmatpush1.bf16.msra.mxu0 %v3834_v62 }
 0x1fa   :  { %2737 = vmatpush1.bf16.msra.mxu1 %v3836_v6  ;;  %2652 = vmatprep.subr.bf16.mxu0 %v3843_v0 }
 0x1fb   :  { %2738 = vmatprep.subr.bf16.mxu1 %v3845_v1 }
 0x1fd   :  { %2653 = vmatpush1.bf16.msra.mxu0 %v3842_v2 }
 0x1fe   :  { %2739 = vmatpush1.bf16.msra.mxu1 %v3844_v3  ;;  %3911 = vmatprep.subr.bf16.mxu0 %v4196_v4 }
 0x1ff   :  { %3933 = vmatprep.subr.bf16.mxu1 %v4197_v7 }
 0x200   :  { %2655 = vmatmul.mubr.bf16.vlgmr.msra.gmra.mrb[8].mxu0 %v4884_v43 }
 0x201   :  { %2741 = vmatmul.mubr.bf16.vlgmr.msra.gmra.mrb[8].mxu1 %v4884_v43  ;;  %3912 = vmatpush3.bf16.msra.mxu0 %v4198_v8  ;;  %v4205_v43 = vld [vmem:[%s5647_s5 + $0xd0] sm:$0xff]  }
 0x202   :  { %3934 = vmatpush3.bf16.msra.mxu1 %v4199_v9  ;;  %3913 = vmatprep.subr.bf16.mxu0 %v4200_v10 }
 0x203   :  { %3935 = vmatprep.subr.bf16.mxu1 %v4201_v11  ;;  %v4230_v11 = vld [vmem:[%s5647_s5 + $0x100] sm:$0xff]  }
 0x205   :  { %3914 = vmatpush3.bf16.msra.mxu0 %v4202_v12  ;;  %v4231_v12 = vld [vmem:[%s5647_s5 + $0x180] sm:$0xff]  }
 0x206   :  { %3936 = vmatpush3.bf16.msra.mxu1 %v4203_v13  ;;  %3915 = vmatprep.subr.bf16.mxu0 %v4204_v14  ;;  %v4232_v13 = vld [vmem:[%s5647_s5 + $0x148] sm:$0xff]  }
 0x207   :  { %3937 = vmatprep.subr.bf16.mxu1 %v4205_v43  ;;  %v4233_v14 = vld [vmem:[%s5647_s5 + $0x1c8] sm:$0xff]  }
 0x208   :  { %v4234_v43 = vld [vmem:[%s5647_s5 + $0x108] sm:$0xff]  }
 0x209   :  { %3916 = vmatpush3.bf16.msra.mxu0 %v4206_v15  ;;  %v4235_v15 = vld [vmem:[%s5647_s5 + $0x188] sm:$0xff]  }
 0x20a   :  { %3938 = vmatpush3.bf16.msra.mxu1 %v4207_v5  ;;  %3917 = vmatprep.subr.bf16.mxu0 %v4208_v16  ;;  %v4236_v5 = vld [vmem:[%s5647_s5 + $0x150] sm:$0xff]  }
 0x20b   :  { %3939 = vmatprep.subr.bf16.mxu1 %v4209_v47  ;;  %v4237_v16 = vld [vmem:[%s5647_s5 + $0x1d0] sm:$0xff]  }
 0x20c   :  { %v4238_v47 = vld [vmem:[%s5647_s5 + $0x110] sm:$0xff]  }
 0x20d   :  { %3918 = vmatpush3.bf16.msra.mxu0 %v4210_v17  ;;  %v4239_v17 = vld [vmem:[%s5647_s5 + $0x190] sm:$0xff]  }
 0x20e   :  { %3940 = vmatpush3.bf16.msra.mxu1 %v4211_v18  ;;  %3919 = vmatprep.subr.bf16.mxu0 %v4212_v19  ;;  %v4240_v18 = vld [vmem:[%s5647_s5 + $0x158] sm:$0xff]  }
 0x20f   :  { %3941 = vmatprep.subr.bf16.mxu1 %v4213_v20  ;;  %v4241_v19 = vld [vmem:[%s5647_s5 + $0x1d8] sm:$0xff]  }
 0x210   :  { %v4242_v20 = vld [vmem:[%s5647_s5 + $0x118] sm:$0xff]  }
 0x211   :  { %3920 = vmatpush3.bf16.msra.mxu0 %v4214_v21  ;;  %v4243_v21 = vld [vmem:[%s5647_s5 + $0x198] sm:$0xff]  }
 0x212   :  { %3942 = vmatpush3.bf16.msra.mxu1 %v4215_v22  ;;  %3921 = vmatprep.subr.bf16.mxu0 %v4216_v23  ;;  %v4244_v22 = vld [vmem:[%s5647_s5 + $0x160] sm:$0xff]  }
 0x213   :  { %3943 = vmatprep.subr.bf16.mxu1 %v4217_v24  ;;  %v4245_v23 = vld [vmem:[%s5647_s5 + $0x1e0] sm:$0xff]  }
 0x214   :  { %v4246_v24 = vld [vmem:[%s5647_s5 + $0x120] sm:$0xff]  }
 0x215   :  { %3922 = vmatpush3.bf16.msra.mxu0 %v4218_v25  ;;  %v4247_v25 = vld [vmem:[%s5647_s5 + $0x1a0] sm:$0xff]  }
 0x216   :  { %3944 = vmatpush3.bf16.msra.mxu1 %v4219_v26  ;;  %3923 = vmatprep.subr.bf16.mxu0 %v4220_v27  ;;  %v4248_v26 = vld [vmem:[%s5647_s5 + $0x168] sm:$0xff]  }
 0x217   :  { %3945 = vmatprep.subr.bf16.mxu1 %v4221_v28  ;;  %v4249_v27 = vld [vmem:[%s5647_s5 + $0x1e8] sm:$0xff]  }
 0x218   :  { %v4250_v28 = vld [vmem:[%s5647_s5 + $0x128] sm:$0xff]  }
 0x219   :  { %3924 = vmatpush3.bf16.msra.mxu0 %v4222_v29  ;;  %v4251_v29 = vld [vmem:[%s5647_s5 + $0x1a8] sm:$0xff]  }
 0x21a   :  { %3946 = vmatpush3.bf16.msra.mxu1 %v4223_v30  ;;  %3925 = vmatprep.subr.bf16.mxu0 %v4224_v31  ;;  %v4252_v30 = vld [vmem:[%s5647_s5 + $0x170] sm:$0xff]  }
 0x21b   :  { %3947 = vmatprep.subr.bf16.mxu1 %v4225_v32  ;;  %v4253_v31 = vld [vmem:[%s5647_s5 + $0x1f0] sm:$0xff]  }
 0x21c   :  { %v4254_v32 = vld [vmem:[%s5647_s5 + $0x130] sm:$0xff]  }
 0x21d   :  { %3926 = vmatpush3.bf16.msra.mxu0 %v4226_v33  ;;  %v4255_v33 = vld [vmem:[%s5647_s5 + $0x1b0] sm:$0xff]  }
 0x21e   :  { %3948 = vmatpush3.bf16.msra.mxu1 %v4227_v34  ;;  %3955 = vmatprep.subr.bf16.mxu0 %v4228_v35  ;;  %v4256_v34 = vld [vmem:[%s5647_s5 + $0x178] sm:$0xff]  }
 0x21f   :  { %3977 = vmatprep.subr.bf16.mxu1 %v4229_v36  ;;  %v4257_v35 = vld [vmem:[%s5647_s5 + $0x1f8] sm:$0xff]  }
 0x220   :  { %v4258_v36 = vld [vmem:[%s5647_s5 + $0x138] sm:$0xff]  }
 0x253   :  { %v2484_v42 = vpop.f32.mrb[4].mxu0  ;;  %v2570_v49 = vpop.f32.mrb[4].mxu1 }
 0x254   :  { %v4007_v50 = vadd.f32 %v2484_v42, %v1090_v38  ;;  %v4011_v51 = vadd.f32 %v2570_v49, %v1098_v39  ;;  %v2486_v52 = vpop.f32.mrb[5].mxu0  ;;  %v2572_v53 = vpop.f32.mrb[5].mxu1  ;;  %v1117_v42 = vsub.s32 7, %v4811_v45 }
 0x255   :  { %v4008_v54 = vadd.f32 %v2486_v52, %v1094_v40  ;;  %v4012_v46 = vadd.f32 %v2572_v53, %v1102_v41  ;;  %v2488_v55 = vpop.f32.mrb[6].mxu0  ;;  %v2574_v56 = vpop.f32.mrb[6].mxu1 }
 0x256   :  { %v4009_v57 = vadd.f32 %v2488_v55, %v1090_v38  ;;  %v4013_v59 = vadd.f32 %v2574_v56, %v1098_v39  ;;  %v2490_v58 = vpop.f32.mrb[7].mxu0  ;;  %v2576_v60 = vpop.f32.mrb[7].mxu1  ;;  %v2751_v62 = vmax.f32 %v4007_v50, 0.0  ;;  %v2753_v6 = vmax.f32 %v4011_v51, 0.0  ;;  %v4259_v38 = vld [vmem:[%s5647_s5 + $0x1b8] sm:$0xff]  }
 0x257   :  { %v4010_v61 = vadd.f32 %v2490_v58, %v1094_v40  ;;  %v4014_v48 = vadd.f32 %v2576_v60, %v1102_v41  ;;  %v2752_v1 = vmax.f32 %v4008_v54, 0.0  ;;  %v2754_v2 = vmax.f32 %v4012_v46, 0.0 }
 0x258   :  { %v2759_v0 = vmax.f32 %v4009_v57, 0.0  ;;  %v2761_v63 = vmax.f32 %v4013_v59, 0.0  ;;  %v1105_v39 = vsub.s32 4, %v4811_v45  ;;  %v1113_v40 = vsub.s32 6, %v4811_v45 }
 0x259   :  { %v2760_v3 = vmax.f32 %v4010_v61, 0.0  ;;  %v2762_v4 = vmax.f32 %v4014_v48, 0.0  ;;  %v1109_v41 = vsub.s32 5, %v4811_v45  ;;  %v1118_v52 = vrot.slane %v5521_v37, %v1117_v42 }
 0x25a   :  { %v2767_v7 = vpack.c.bf16 %v2759_v0, %v2751_v62  ;;  %v2769_v8 = vpack.c.bf16 %v2761_v63, %v2753_v6  ;;  %v1106_v49 = vrot.slane %v5521_v37, %v1105_v39  ;;  %v1114_v50 = vrot.slane %v5521_v37, %v1113_v40 }
 0x25b   :  { %v2768_v9 = vpack.c.bf16 %v2760_v3, %v2752_v1  ;;  %v2770_v10 = vpack.c.bf16 %v2762_v4, %v2754_v2  ;;  %v1110_v51 = vrot.slane %v5521_v37, %v1109_v41 }
 0x25d   :  { %3326 = vmatprep.mubr.bf16.mxu0 %v2768_v9  ;;  %3367 = vmatprep.mubr.bf16.mxu1 %v2770_v10 }
 0x25e   :  { %3327 = vmatmul.mubr.bf16.vlgmr.msra.gmra.mrb[12].mxu0 %v2767_v7  ;;  %3368 = vmatmul.mubr.bf16.vlgmr.msra.gmra.mrb[12].mxu1 %v2769_v8 }
 0x25f   :  { %3956 = vmatpush3.bf16.msra.mxu0 %v4230_v11  ;;  %3978 = vmatpush3.bf16.msra.mxu1 %v4231_v12 }
 0x260   :  { %3957 = vmatprep.subr.bf16.mxu0 %v4232_v13  ;;  %3979 = vmatprep.subr.bf16.mxu1 %v4233_v14 }
 0x263   :  { %3958 = vmatpush3.bf16.msra.mxu0 %v4234_v43  ;;  %3980 = vmatpush3.bf16.msra.mxu1 %v4235_v15  ;;  %v3846_v15 = vld [vmem:[%s5649_s6] ss:$0 sm:$0xff] }
 0x264   :  { %3959 = vmatprep.subr.bf16.mxu0 %v4236_v5  ;;  %3981 = vmatprep.subr.bf16.mxu1 %v4237_v16 }
 0x267   :  { %3960 = vmatpush3.bf16.msra.mxu0 %v4238_v47  ;;  %3982 = vmatpush3.bf16.msra.mxu1 %v4239_v17 }
 0x268   :  { %3961 = vmatprep.subr.bf16.mxu0 %v4240_v18  ;;  %3983 = vmatprep.subr.bf16.mxu1 %v4241_v19 }
 0x26b   :  { %3962 = vmatpush3.bf16.msra.mxu0 %v4242_v20  ;;  %3984 = vmatpush3.bf16.msra.mxu1 %v4243_v21 }
 0x26c   :  { %3963 = vmatprep.subr.bf16.mxu0 %v4244_v22  ;;  %3985 = vmatprep.subr.bf16.mxu1 %v4245_v23 }
 0x26f   :  { %3964 = vmatpush3.bf16.msra.mxu0 %v4246_v24  ;;  %3986 = vmatpush3.bf16.msra.mxu1 %v4247_v25 }
 0x270   :  { %3965 = vmatprep.subr.bf16.mxu0 %v4248_v26  ;;  %3987 = vmatprep.subr.bf16.mxu1 %v4249_v27 }
 0x273   :  { %3966 = vmatpush3.bf16.msra.mxu0 %v4250_v28  ;;  %3988 = vmatpush3.bf16.msra.mxu1 %v4251_v29 }
 0x274   :  { %3967 = vmatprep.subr.bf16.mxu0 %v4252_v30  ;;  %3989 = vmatprep.subr.bf16.mxu1 %v4253_v31  ;;  %v3459_v31 = vand.u32 127, %v129_v44 }
 0x276   :  { %vm3460_vm0 = vcmp.lt.s32.totalorder %v3459_v31, 2 }
 0x277   :  { %3968 = vmatpush3.bf16.msra.mxu0 %v4254_v32  ;;  %3990 = vmatpush3.bf16.msra.mxu1 %v4255_v33 }
 0x278   :  { %3969 = vmatprep.subr.bf16.mxu0 %v4256_v34  ;;  %3991 = vmatprep.subr.bf16.mxu1 %v4257_v35 }
 0x27b   :  { %3970 = vmatpush3.bf16.msra.mxu0 %v4258_v36  ;;  %3992 = vmatpush3.bf16.msra.mxu1 %v4259_v38 }
 0x2d3   :  { %v2656_v53 = vpop.f32.mrb[8].mxu0 }
 0x2d4   :  { %v4015_v54 = vadd.f32 %v2656_v53, %v1106_v49  ;;  %v2742_v46 = vpop.f32.mrb[8].mxu1  ;;  %v2658_v55 = vpop.f32.mrb[9].mxu0 }
 0x2d5   :  { %v4019_v56 = vadd.f32 %v2742_v46, %v1114_v50  ;;  %v4016_v57 = vadd.f32 %v2658_v55, %v1110_v51  ;;  %v2744_v59 = vpop.f32.mrb[9].mxu1  ;;  %v2660_v58 = vpop.f32.mrb[10].mxu0 }
 0x2d6   :  { %v4020_v60 = vadd.f32 %v2744_v59, %v1118_v52  ;;  %v4017_v61 = vadd.f32 %v2660_v58, %v1106_v49  ;;  %v2746_v48 = vpop.f32.mrb[10].mxu1  ;;  %v2662_v45 = vpop.f32.mrb[11].mxu0  ;;  %v2755_v63 = vmax.f32 %v4015_v54, 0.0 }
 0x2d7   :  { %v4021_v62 = vadd.f32 %v2746_v48, %v1114_v50  ;;  %v4018_v6 = vadd.f32 %v2662_v45, %v1110_v51  ;;  %v2748_v0 = vpop.f32.mrb[11].mxu1  ;;  %v2757_v3 = vmax.f32 %v4019_v56, 0.0  ;;  %v2756_v37 = vmax.f32 %v4016_v57, 0.0 }
 0x2d8   :  { %v2763_v1 = vmax.f32 %v4017_v61, 0.0  ;;  %v4022_v2 = vadd.f32 %v2748_v0, %v1118_v52  ;;  %v2758_v8 = vmax.f32 %v4020_v60, 0.0 }
 0x2d9   :  { %v2765_v4 = vmax.f32 %v4021_v62, 0.0  ;;  %v2764_v7 = vmax.f32 %v4018_v6, 0.0 }
 0x2da   :  { %v2771_v9 = vpack.c.bf16 %v2763_v1, %v2755_v63  ;;  %v2766_v10 = vmax.f32 %v4022_v2, 0.0 }
 0x2db   :  { %v2773_v11 = vpack.c.bf16 %v2765_v4, %v2757_v3  ;;  %v2772_v12 = vpack.c.bf16 %v2764_v7, %v2756_v37 }
 0x2dc   :  { %v2774_v13 = vpack.c.bf16 %v2766_v10, %v2758_v8 }
 0x2dd   :  { %3408 = vmatprep.mubr.bf16.mxu0 %v2772_v12 }
 0x2de   :  { %3449 = vmatprep.mubr.bf16.mxu1 %v2774_v13  ;;  %3409 = vmatmul.mubr.bf16.vlgmr.msra.gmra.mrb[16].mxu0 %v2771_v9 }
 0x2df   :  { %3450 = vmatmul.mubr.bf16.vlgmr.msra.gmra.mrb[16].mxu1 %v2773_v11 }
 0x331   :  { %v3927_v14 = vpop.f32.mrb[12].mxu0  ;;  %v3949_v43 = vpop.f32.mrb[12].mxu1 }
 0x332   :  { %v3928_v5 = vpop.f32.mrb[13].mxu0  ;;  %v3950_v16 = vpop.f32.mrb[13].mxu1 }
 0x333   :  { %v3929_v47 = vadd.f32 %v3928_v5, %v3927_v14  ;;  %v3951_v17 = vadd.f32 %v3950_v16, %v3949_v43  ;;  %v3930_v18 = vpop.f32.mrb[14].mxu0  ;;  %v3952_v19 = vpop.f32.mrb[14].mxu1 }
 0x334   :  { %v3931_v20 = vpop.f32.mrb[15].mxu0  ;;  %v3953_v21 = vpop.f32.mrb[15].mxu1 }
 0x335   :  { %v3329_v22 = vadd.f32 %v3929_v47, %v3846_v15  ;;  %v3932_v23 = vadd.f32 %v3931_v20, %v3930_v18  ;;  %v3954_v24 = vadd.f32 %v3953_v21, %v3952_v19 }
 0x337   :  { %v3370_v25 = vadd.f32 %v3951_v17, %v3329_v22  ;;  %v3332_v26 = vadd.f32 %v3932_v23, %v3846_v15 }
 0x339   :  { %v3373_v27 = vadd.f32 %v3954_v24, %v3332_v26 }
 0x3b1   :  { %v3971_v28 = vpop.f32.mrb[16].mxu0 }
 0x3b2   :  { %v3993_v29 = vpop.f32.mrb[16].mxu1  ;;  %v3972_v30 = vpop.f32.mrb[17].mxu0 }
 0x3b3   :  { %v3973_v32 = vadd.f32 %v3972_v30, %v3971_v28  ;;  %v3994_v33 = vpop.f32.mrb[17].mxu1  ;;  %v3974_v34 = vpop.f32.mrb[18].mxu0 }
 0x3b4   :  { %v3995_v35 = vadd.f32 %v3994_v33, %v3993_v29  ;;  %v3996_v36 = vpop.f32.mrb[18].mxu1  ;;  %v3975_v38 = vpop.f32.mrb[19].mxu0 }
 0x3b5   :  { %v3411_v39 = vadd.f32 %v3973_v32, %v3370_v25  ;;  %v3976_v40 = vadd.f32 %v3975_v38, %v3974_v34  ;;  %v3997_v41 = vpop.f32.mrb[19].mxu1 }
 0x3b6   :  { %v3998_v42 = vadd.f32 %v3997_v41, %v3996_v36 }
 0x3b7   :  { %v3452_v49 = vadd.f32 %v3995_v35, %v3411_v39  ;;  %v3414_v50 = vadd.f32 %v3976_v40, %v3373_v27 }
 0x3b9   :  { %v3455_v51 = vadd.f32 %v3998_v42, %v3414_v50  ;;  %v3461_v52 = vsel %vm3460_vm0, %v3452_v49, -1e+30 }
 0x3ba   :  { %3463 = vmax.xlane.f32.xlu0 %v3461_v52 }
 0x3bb   :  { %v3462_v53 = vsel %vm3460_vm0, %v3455_v51, -1e+30 }
 0x3be   :  { %3465 = vmax.xlane.f32.xlu0 %v3462_v53 }
 0x447   :  { %v3464_v54 = vpop.xlane.xlu0 %3463 }
 0x448   :  { %v3467_v44 = vsub.f32 %v3461_v52, %v3464_v54 }
 0x44a   :  { %v3469_v46 = vmul.f32 1.442695, %v3467_v44 }
 0x44b   :  { %v3466_v55 = vpop.xlane.xlu0 %3465 }
 0x44c   :  { %v3468_v56 = vsub.f32 %v3462_v53, %v3466_v55  ;;  %4260 = vpow2.f32 %v3469_v46 }
 0x44e   :  { %v3471_v57 = vmul.f32 1.442695, %v3468_v56 }
 0x450   :  { %4262 = vpow2.f32 %v3471_v57 }
 0x456   :  { %v4261_v59 = vpop.eup %4260 }
 0x457   :  { %3473 = vadd.xlane.f32.xlu1 %v4261_v59 }
 0x45a   :  { %v4263_v58 = vpop.eup %4262 }
 0x45b   :  { %3475 = vadd.xlane.f32.xlu1 %v4263_v58 }
 0x4e4   :  { %v3474_v60 = vpop.xlane.xlu1 %3473 }
 0x4e5   :  { %4264 = vlog2.f32 %v3474_v60 }
 0x4e8   :  { %v3476_v61 = vpop.xlane.xlu1 %3475 }
 0x4e9   :  { %4266 = vlog2.f32 %v3476_v61 }
 0x4ef   :  { %v4265_v48 = vpop.eup %4264 }
 0x4f0   :  { %v3478_v45 = vmul.f32 0.6931472, %v4265_v48 }
 0x4f2   :  { %v3481_v62 = vadd.f32 %v3478_v45, %v3464_v54 }
 0x4f3   :  { %v4267_v6 = vpop.eup %4266 }
 0x4f4   :  { %v3483_v0 = vsub.f32 %v3461_v52, %v3481_v62  ;;  %v3480_v63 = vmul.f32 0.6931472, %v4267_v6 }
 0x4f6   :  { %3485 = vst [vmem:[%s5650_s7] sm:$0xff] %v3483_v0  ;;  %v3482_v1 = vadd.f32 %v3480_v63, %v3466_v55 }
 0x4f8   :  { %v3484_v2 = vsub.f32 %v3462_v53, %v3482_v1 }
 0x4fa   :  { %3486 = vst [vmem:[%s5650_s7 + $0x8] sm:$0xff] %v3484_v2 }

</bundles_post_ra>
